<compile_context>
chip_gen: v7x
topology: tpu7x:2x2x1
jax: 0.10.0
libtpu: 0.0.40
codegen_flags: <defaults>
</compile_context>

<pallas_src>
import functools

import jax
import jax.numpy as jnp
import numpy as np
from jax import lax
from jax.experimental import pallas as pl
from jax.experimental.pallas import tpu as pltpu


def cnn_kernel(pt_ref, wc_ref, bc_ref, fcw_ref, fcb_ref, out_ref):
    # pt_ref : (4, 27, BB*256) bf16   im2col patches, 4 pool quadrants
    # wc_ref : (8, 27)         bf16   conv weight (rows 6,7 are zero padding)
    # bc_ref : (8, 1)          f32    conv bias   (rows 6,7 are zero padding)
    # fcw_ref: (10, 1536)      f32    torch fc1.weight, k = c*256 + i*16 + j
    # fcb_ref: (1, 10)         f32
    # out_ref: (BB, 10)        f32
    bb = pt_ref.shape[2] // 256
    wc = wc_ref[...]

    # Convolution for each pool quadrant: one wide MXU matmul per quadrant.
    c0 = jnp.dot(wc, pt_ref[0], preferred_element_type=jnp.float32)
    c1 = jnp.dot(wc, pt_ref[1], preferred_element_type=jnp.float32)
    c2 = jnp.dot(wc, pt_ref[2], preferred_element_type=jnp.float32)
    c3 = jnp.dot(wc, pt_ref[3], preferred_element_type=jnp.float32)

    # 2x2 max-pool == elementwise max over the 4 quadrants (bias add and ReLU
    # commute with the max, so apply them once afterwards).
    m = jnp.maximum(jnp.maximum(c0, c1), jnp.maximum(c2, c3))       # (8, BB*256)
    pooled = jnp.maximum(m + bc_ref[...], 0.0)                      # (8, BB*256)

    # Lane -> (image, pixel) regrouping: (8, BB*256) -> (8, BB, 256).  Both
    # trailing dims are (8,128)-tile multiples, so this is a tile regrouping.
    pooled3 = pooled.reshape(8, bb, 256)

    # Fully connected: logits[b,o] = sum_c sum_s pooled3[c,b,s] * W[o, c*256+s]
    acc = jnp.zeros((bb, 10), jnp.float32)
    for c in range(6):
        acc = acc + lax.dot_general(
            pooled3[c],                                # (BB, 256)
            fcw_ref[:, c * 256:(c + 1) * 256],         # (10, 256)
            (((1,), (1,)), ((), ())),
            preferred_element_type=jnp.float32)        # (BB, 10)
    logits = acc + fcb_ref[...]                                     # (BB, 10)

    # log_softmax along dim=1 in f32.
    mx = jnp.max(logits, axis=-1, keepdims=True)
    sh = logits - mx
    lse = jnp.log(jnp.sum(jnp.exp(sh), axis=-1, keepdims=True))
    out_ref[...] = (sh - lse).astype(out_ref.dtype)


def _im2col_quadrant_layout(x):
    """(B,3,32,32) NCHW -> (4, 27, B*256) patches (quadrant-major columns)."""
    B = x.shape[0]
    xp = jnp.pad(x, ((0, 0), (0, 0), (1, 1), (1, 1)))               # (B,3,34,34)
    quads = []
    for py in range(2):
        for px in range(2):
            taps = []
            for ci in range(3):
                for dy in range(3):
                    for dx in range(3):
                        sl = xp[:, ci,
                                py + dy: py + dy + 32: 2,
                                px + dx: px + dx + 32: 2]            # (B,16,16)
                        taps.append(sl.reshape(B, 256))
            quads.append(jnp.stack(taps, axis=1))                    # (B, 27, 256)
    q = jnp.stack(quads, axis=0)                                     # (4, B, 27, 256)
    return q.transpose(0, 2, 1, 3).reshape(4, 27, B * 256)           # (4, 27, B*256)


@functools.partial(jax.jit, static_argnames=("block_b",))
def cnn_forward(x, conv_w, conv_b, fc_w, fc_b, *, block_b=64):
    B = x.shape[0]
    # Batch block: multiple of 8 (sublane tile), capped at block_b (bf16 patches
    # for BB=64 keep double-buffered input ~8 MiB -> fits v5e/v6e/v7x VMEM).
    bb = min(block_b, ((B + 7) // 8) * 8)
    bb = max(8, (bb // 8) * 8)
    n_blocks = -(-B // bb)
    b_pad = n_blocks * bb

    # Patches in bf16 (halves streamed HBM bytes; conv accumulates in f32).
    patches = _im2col_quadrant_layout(x.astype(jnp.float32))         # (4,27,B*256)
    if b_pad != B:
        patches = jnp.pad(patches, ((0, 0), (0, 0), (0, (b_pad - B) * 256)))
    patches = patches.astype(jnp.bfloat16)

    # Conv weight/bias padded from 6 to 8 output channels (zeros) so the conv
    # output occupies a full sublane tile.
    wc = jnp.zeros((8, 27), jnp.float32).at[:6].set(
        conv_w.reshape(6, 27)).astype(jnp.bfloat16)
    bc = jnp.zeros((8, 1), jnp.float32).at[:6, 0].set(conv_b)
    fcw = fc_w.astype(jnp.float32)                                   # (10, 1536)
    fcb = fc_b.reshape(1, 10).astype(jnp.float32)

    grid_spec = pltpu.PrefetchScalarGridSpec(
        num_scalar_prefetch=0,
        grid=(n_blocks,),
        in_specs=[
            pl.BlockSpec((4, 27, bb * 256), lambda i: (0, 0, i)),
            pl.BlockSpec((8, 27), lambda i: (0, 0)),
            pl.BlockSpec((8, 1), lambda i: (0, 0)),
            pl.BlockSpec((10, 1536), lambda i: (0, 0)),
            pl.BlockSpec((1, 10), lambda i: (0, 0)),
        ],
        out_specs=pl.BlockSpec((bb, 10), lambda i: (i, 0)),
    )
    out = pl.pallas_call(
        cnn_kernel,
        out_shape=jax.ShapeDtypeStruct((b_pad, 10), jnp.float32),
        grid_spec=grid_spec,
        compiler_params=pltpu.CompilerParams(
            dimension_semantics=("parallel",),
            vmem_limit_bytes=32 * 1024 * 1024),
    )(patches, wc, bc, fcw, fcb)
    return out[:B]


def reference_forward(x, conv_w, conv_b, fc_w, fc_b):
    conv = jax.lax.conv_general_dilated(
        x, conv_w, window_strides=(1, 1), padding=((1, 1), (1, 1)),
        dimension_numbers=("NCHW", "OIHW", "NCHW"))
    conv = jnp.maximum(conv + conv_b[None, :, None, None], 0.0)
    B = x.shape[0]
    pooled = conv.reshape(B, 6, 16, 2, 16, 2).max(axis=(3, 5))
    flat = pooled.reshape(B, 6 * 16 * 16)
    logits = flat @ fc_w.T + fc_b
    return jax.nn.log_softmax(logits, axis=1)


if __name__ == "__main__":
    key = jax.random.PRNGKey(0)
    kx, k1, k2, k3, k4 = jax.random.split(key, 5)
    B = 2  # CIFAR-10 forces 3x32x32 spatial (flatten assumes 6*16*16)
    x = jax.random.normal(kx, (B, 3, 32, 32), dtype=jnp.float32)

    # Deterministic synthetic parameters (shapes from the module's __init__)
    conv_w = jax.random.normal(k1, (6, 3, 3, 3), dtype=jnp.float32) / np.sqrt(27.0)
    conv_b = jax.random.normal(k2, (6,), dtype=jnp.float32) * 0.05
    fc_w = jax.random.normal(k3, (10, 6 * 16 * 16), dtype=jnp.float32) / np.sqrt(1536.0)
    fc_b = jax.random.normal(k4, (10,), dtype=jnp.float32) * 0.05

    out = jax.block_until_ready(cnn_forward(x, conv_w, conv_b, fc_w, fc_b))

    ref = reference_forward(x, conv_w, conv_b, fc_w, fc_b)
    # bf16 patches / conv weights -> looser tolerance than the all-f32 version.
    np.testing.assert_allclose(np.asarray(out), np.asarray(ref), atol=3e-2, rtol=3e-2)
    print("KERNEL_OK")
</pallas_src>

<mosaic_0001>
module attributes {stable_mosaic.version = 11 : i64} {
  func.func @cnn_kernel(%arg0: i32, %arg1: memref<4x27x2048xbf16, #tpu.memory_space<vmem>>, %arg2: memref<8x27xbf16, #tpu.memory_space<vmem>>, %arg3: memref<8x1xf32, #tpu.memory_space<vmem>>, %arg4: memref<10x1536xf32, #tpu.memory_space<vmem>>, %arg5: memref<1x10xf32, #tpu.memory_space<vmem>>, %arg6: memref<8x10xf32, #tpu.memory_space<vmem>>) attributes {dimension_semantics = [#tpu.dimension_semantics<parallel>], iteration_bounds = array<i64: 1>, scalar_prefetch = 0 : i64, scratch_operands = 0 : i64, tpu.core_type = #tpu.core_type<tc>, window_params = [{transform_indices = @transform_0, window_bounds = array<i64: 4, 27, 2048>}, {pipeline_mode = #tpu.pipeline_mode<synchronous>, transform_indices = @transform_1, window_bounds = array<i64: 8, 27>}, {pipeline_mode = #tpu.pipeline_mode<synchronous>, transform_indices = @transform_2, window_bounds = array<i64: 8, 1>}, {pipeline_mode = #tpu.pipeline_mode<synchronous>, transform_indices = @transform_3, window_bounds = array<i64: 10, 1536>}, {pipeline_mode = #tpu.pipeline_mode<synchronous>, transform_indices = @transform_4, window_bounds = array<i64: 1, 10>}, {transform_indices = @transform_5, window_bounds = array<i64: 8, 10>}]} {
    %c0 = arith.constant 0 : index
    %c0_0 = arith.constant 0 : index
    %0 = vector.load %arg2[%c0, %c0_0] : memref<8x27xbf16, #tpu.memory_space<vmem>>, vector<8x27xbf16>
    %c0_1 = arith.constant 0 : index
    %c0_2 = arith.constant 0 : index
    %c0_3 = arith.constant 0 : index
    %1 = vector.load %arg1[%c0_1, %c0_2, %c0_3] : memref<4x27x2048xbf16, #tpu.memory_space<vmem>>, vector<1x27x2048xbf16>
    %2 = vector.shape_cast %1 : vector<1x27x2048xbf16> to vector<27x2048xbf16>
    %cst = arith.constant dense<0.000000e+00> : vector<8x2048xf32>
    %3 = tpu.matmul %0, %2, %cst {dimension_numbers = #tpu.dot_dimension_numbers<[1], [0], [0], [1], [0, 0, 1, 1], [], []>} : vector<8x27xbf16>, vector<27x2048xbf16>, vector<8x2048xf32> -> vector<8x2048xf32>
    %c1 = arith.constant 1 : index
    %c0_4 = arith.constant 0 : index
    %c0_5 = arith.constant 0 : index
    %4 = vector.load %arg1[%c1, %c0_4, %c0_5] : memref<4x27x2048xbf16, #tpu.memory_space<vmem>>, vector<1x27x2048xbf16>
    %5 = vector.shape_cast %4 : vector<1x27x2048xbf16> to vector<27x2048xbf16>
    %cst_6 = arith.constant dense<0.000000e+00> : vector<8x2048xf32>
    %6 = tpu.matmul %0, %5, %cst_6 {dimension_numbers = #tpu.dot_dimension_numbers<[1], [0], [0], [1], [0, 0, 1, 1], [], []>} : vector<8x27xbf16>, vector<27x2048xbf16>, vector<8x2048xf32> -> vector<8x2048xf32>
    %c2 = arith.constant 2 : index
    %c0_7 = arith.constant 0 : index
    %c0_8 = arith.constant 0 : index
    %7 = vector.load %arg1[%c2, %c0_7, %c0_8] : memref<4x27x2048xbf16, #tpu.memory_space<vmem>>, vector<1x27x2048xbf16>
    %8 = vector.shape_cast %7 : vector<1x27x2048xbf16> to vector<27x2048xbf16>
    %cst_9 = arith.constant dense<0.000000e+00> : vector<8x2048xf32>
    %9 = tpu.matmul %0, %8, %cst_9 {dimension_numbers = #tpu.dot_dimension_numbers<[1], [0], [0], [1], [0, 0, 1, 1], [], []>} : vector<8x27xbf16>, vector<27x2048xbf16>, vector<8x2048xf32> -> vector<8x2048xf32>
    %c3 = arith.constant 3 : index
    %c0_10 = arith.constant 0 : index
    %c0_11 = arith.constant 0 : index
    %10 = vector.load %arg1[%c3, %c0_10, %c0_11] : memref<4x27x2048xbf16, #tpu.memory_space<vmem>>, vector<1x27x2048xbf16>
    %11 = vector.shape_cast %10 : vector<1x27x2048xbf16> to vector<27x2048xbf16>
    %cst_12 = arith.constant dense<0.000000e+00> : vector<8x2048xf32>
    %12 = tpu.matmul %0, %11, %cst_12 {dimension_numbers = #tpu.dot_dimension_numbers<[1], [0], [0], [1], [0, 0, 1, 1], [], []>} : vector<8x27xbf16>, vector<27x2048xbf16>, vector<8x2048xf32> -> vector<8x2048xf32>
    %13 = arith.maximumf %3, %6 : vector<8x2048xf32>
    %14 = arith.maximumf %9, %12 : vector<8x2048xf32>
    %15 = arith.maximumf %13, %14 : vector<8x2048xf32>
    %c0_13 = arith.constant 0 : index
    %c0_14 = arith.constant 0 : index
    %16 = vector.load %arg3[%c0_13, %c0_14] : memref<8x1xf32, #tpu.memory_space<vmem>>, vector<8x1xf32>
    %17 = vector.broadcast %16 : vector<8x1xf32> to vector<8x2048xf32>
    %18 = arith.addf %15, %17 : vector<8x2048xf32>
    %cst_15 = arith.constant 0.000000e+00 : f32
    %19 = vector.broadcast %cst_15 : f32 to vector<8x2048xf32>
    %20 = arith.maximumf %18, %19 : vector<8x2048xf32>
    %21 = vector.shape_cast %20 : vector<8x2048xf32> to vector<8x8x256xf32>
    %cst_16 = arith.constant 0.000000e+00 : f32
    %22 = vector.broadcast %cst_16 : f32 to vector<8x10xf32>
    %23 = vector.extract_strided_slice %21 {offsets = [0, 0, 0], sizes = [1, 8, 256], strides = [1, 1, 1]} : vector<8x8x256xf32> to vector<1x8x256xf32>
    %24 = vector.shape_cast %23 : vector<1x8x256xf32> to vector<8x256xf32>
    %c0_17 = arith.constant 0 : index
    %c0_18 = arith.constant 0 : index
    %25 = vector.load %arg4[%c0_17, %c0_18] : memref<10x1536xf32, #tpu.memory_space<vmem>>, vector<10x256xf32>
    %cst_19 = arith.constant dense<0.000000e+00> : vector<8x10xf32>
    %26 = tpu.matmul %24, %25, %cst_19 {dimension_numbers = #tpu.dot_dimension_numbers<[1], [1], [0], [0], [0, 0, 1, 0], [], []>} : vector<8x256xf32>, vector<10x256xf32>, vector<8x10xf32> -> vector<8x10xf32>
    %27 = arith.addf %22, %26 : vector<8x10xf32>
    %28 = vector.extract_strided_slice %21 {offsets = [1, 0, 0], sizes = [1, 8, 256], strides = [1, 1, 1]} : vector<8x8x256xf32> to vector<1x8x256xf32>
    %29 = vector.shape_cast %28 : vector<1x8x256xf32> to vector<8x256xf32>
    %c0_20 = arith.constant 0 : index
    %c256 = arith.constant 256 : index
    %30 = vector.load %arg4[%c0_20, %c256] : memref<10x1536xf32, #tpu.memory_space<vmem>>, vector<10x256xf32>
    %cst_21 = arith.constant dense<0.000000e+00> : vector<8x10xf32>
    %31 = tpu.matmul %29, %30, %cst_21 {dimension_numbers = #tpu.dot_dimension_numbers<[1], [1], [0], [0], [0, 0, 1, 0], [], []>} : vector<8x256xf32>, vector<10x256xf32>, vector<8x10xf32> -> vector<8x10xf32>
    %32 = arith.addf %27, %31 : vector<8x10xf32>
    %33 = vector.extract_strided_slice %21 {offsets = [2, 0, 0], sizes = [1, 8, 256], strides = [1, 1, 1]} : vector<8x8x256xf32> to vector<1x8x256xf32>
    %34 = vector.shape_cast %33 : vector<1x8x256xf32> to vector<8x256xf32>
    %c0_22 = arith.constant 0 : index
    %c512 = arith.constant 512 : index
    %35 = vector.load %arg4[%c0_22, %c512] : memref<10x1536xf32, #tpu.memory_space<vmem>>, vector<10x256xf32>
    %cst_23 = arith.constant dense<0.000000e+00> : vector<8x10xf32>
    %36 = tpu.matmul %34, %35, %cst_23 {dimension_numbers = #tpu.dot_dimension_numbers<[1], [1], [0], [0], [0, 0, 1, 0], [], []>} : vector<8x256xf32>, vector<10x256xf32>, vector<8x10xf32> -> vector<8x10xf32>
    %37 = arith.addf %32, %36 : vector<8x10xf32>
    %38 = vector.extract_strided_slice %21 {offsets = [3, 0, 0], sizes = [1, 8, 256], strides = [1, 1, 1]} : vector<8x8x256xf32> to vector<1x8x256xf32>
    %39 = vector.shape_cast %38 : vector<1x8x256xf32> to vector<8x256xf32>
    %c0_24 = arith.constant 0 : index
    %c768 = arith.constant 768 : index
    %40 = vector.load %arg4[%c0_24, %c768] : memref<10x1536xf32, #tpu.memory_space<vmem>>, vector<10x256xf32>
    %cst_25 = arith.constant dense<0.000000e+00> : vector<8x10xf32>
    %41 = tpu.matmul %39, %40, %cst_25 {dimension_numbers = #tpu.dot_dimension_numbers<[1], [1], [0], [0], [0, 0, 1, 0], [], []>} : vector<8x256xf32>, vector<10x256xf32>, vector<8x10xf32> -> vector<8x10xf32>
    %42 = arith.addf %37, %41 : vector<8x10xf32>
    %43 = vector.extract_strided_slice %21 {offsets = [4, 0, 0], sizes = [1, 8, 256], strides = [1, 1, 1]} : vector<8x8x256xf32> to vector<1x8x256xf32>
    %44 = vector.shape_cast %43 : vector<1x8x256xf32> to vector<8x256xf32>
    %c0_26 = arith.constant 0 : index
    %c1024 = arith.constant 1024 : index
    %45 = vector.load %arg4[%c0_26, %c1024] : memref<10x1536xf32, #tpu.memory_space<vmem>>, vector<10x256xf32>
    %cst_27 = arith.constant dense<0.000000e+00> : vector<8x10xf32>
    %46 = tpu.matmul %44, %45, %cst_27 {dimension_numbers = #tpu.dot_dimension_numbers<[1], [1], [0], [0], [0, 0, 1, 0], [], []>} : vector<8x256xf32>, vector<10x256xf32>, vector<8x10xf32> -> vector<8x10xf32>
    %47 = arith.addf %42, %46 : vector<8x10xf32>
    %48 = vector.extract_strided_slice %21 {offsets = [5, 0, 0], sizes = [1, 8, 256], strides = [1, 1, 1]} : vector<8x8x256xf32> to vector<1x8x256xf32>
    %49 = vector.shape_cast %48 : vector<1x8x256xf32> to vector<8x256xf32>
    %c0_28 = arith.constant 0 : index
    %c1280 = arith.constant 1280 : index
    %50 = vector.load %arg4[%c0_28, %c1280] : memref<10x1536xf32, #tpu.memory_space<vmem>>, vector<10x256xf32>
    %cst_29 = arith.constant dense<0.000000e+00> : vector<8x10xf32>
    %51 = tpu.matmul %49, %50, %cst_29 {dimension_numbers = #tpu.dot_dimension_numbers<[1], [1], [0], [0], [0, 0, 1, 0], [], []>} : vector<8x256xf32>, vector<10x256xf32>, vector<8x10xf32> -> vector<8x10xf32>
    %52 = arith.addf %47, %51 : vector<8x10xf32>
    %c0_30 = arith.constant 0 : index
    %c0_31 = arith.constant 0 : index
    %53 = vector.load %arg5[%c0_30, %c0_31] : memref<1x10xf32, #tpu.memory_space<vmem>>, vector<1x10xf32>
    %54 = vector.broadcast %53 : vector<1x10xf32> to vector<8x10xf32>
    %55 = arith.addf %52, %54 : vector<8x10xf32>
    %cst_32 = arith.constant dense<0xFF800000> : vector<8xf32>
    %56 = vector.multi_reduction <maximumf>, %55, %cst_32 [1] : vector<8x10xf32> to vector<8xf32>
    %57 = vector.shape_cast %56 : vector<8xf32> to vector<8x1xf32>
    %58 = vector.broadcast %57 : vector<8x1xf32> to vector<8x10xf32>
    %59 = arith.subf %55, %58 : vector<8x10xf32>
    %60 = math.exp %59 : vector<8x10xf32>
    %cst_33 = arith.constant dense<0.000000e+00> : vector<8xf32>
    %61 = vector.multi_reduction <add>, %60, %cst_33 [1] : vector<8x10xf32> to vector<8xf32>
    %62 = vector.shape_cast %61 : vector<8xf32> to vector<8x1xf32>
    %63 = math.log %62 : vector<8x1xf32>
    %64 = vector.broadcast %63 : vector<8x1xf32> to vector<8x10xf32>
    %65 = arith.subf %59, %64 : vector<8x10xf32>
    %c0_34 = arith.constant 0 : index
    %c0_35 = arith.constant 0 : index
    %66 = vector.load %arg6[%c0_34, %c0_35] : memref<8x10xf32, #tpu.memory_space<vmem>>, vector<8x10xf32>
    tpu.vector_store %arg6[%c0_34, %c0_35], %65 {strides = array<i32>} : memref<8x10xf32, #tpu.memory_space<vmem>>, vector<8x10xf32>,
    return
  }
  func.func @transform_0(%arg0: i32) -> (i32, i32, i32) {
    %c0_i32 = arith.constant 0 : i32
    %c0_i32_0 = arith.constant 0 : i32
    %c0_i32_1 = arith.constant 0 : i32
    return %c0_i32, %c0_i32_0, %arg0 : i32, i32, i32
  }
  func.func @transform_1(%arg0: i32) -> (i32, i32) {
    %c0_i32 = arith.constant 0 : i32
    %c0_i32_0 = arith.constant 0 : i32
    %c0_i32_1 = arith.constant 0 : i32
    return %c0_i32, %c0_i32_0 : i32, i32
  }
  func.func @transform_2(%arg0: i32) -> (i32, i32) {
    %c0_i32 = arith.constant 0 : i32
    %c0_i32_0 = arith.constant 0 : i32
    %c0_i32_1 = arith.constant 0 : i32
    return %c0_i32, %c0_i32_0 : i32, i32
  }
  func.func @transform_3(%arg0: i32) -> (i32, i32) {
    %c0_i32 = arith.constant 0 : i32
    %c0_i32_0 = arith.constant 0 : i32
    %c0_i32_1 = arith.constant 0 : i32
    return %c0_i32, %c0_i32_0 : i32, i32
  }
  func.func @transform_4(%arg0: i32) -> (i32, i32) {
    %c0_i32 = arith.constant 0 : i32
    %c0_i32_0 = arith.constant 0 : i32
    %c0_i32_1 = arith.constant 0 : i32
    return %c0_i32, %c0_i32_0 : i32, i32
  }
  func.func @transform_5(%arg0: i32) -> (i32, i32) {
    %c0_i32 = arith.constant 0 : i32
    %c0_i32_0 = arith.constant 0 : i32
    return %arg0, %c0_i32 : i32, i32
  }
}

</mosaic_0001>

<bundles_post_ra>
// kernel: squeeze.11
= control target key start
LH: loop header
LB: loop body
LE: loop exit
PB: predicated region body
PF: predicated region fallthrough
CT: control target
= control target key end

     0   :  { %s74_s10 = smov 12  ;;  %s99_s11 = smov 3  ;;  %vm76_vm0 = vcmask 1043458   ;;  %vm66_vm1 = vcmask 130048   ;;  %vm80_vm2 = vcmask 1048448   ;;  %vm94_vm3 = vcmask 917248   ;;  %s242_s0 = inlined_call_operand.vmem [shape: bf16[2,1,16,16], index: 0, kind: input, shape index: {}]   ;;  %s243_s1 = inlined_call_operand.vmem [shape: bf16[2,1,256], index: 1, kind: output, shape index: {}]  }
   0x1   :  { %v196_v0 = vld [vmem:[%s242_s0 + $0x8] sm:$0xff]   ;;  %v193_v1 = vld [vmem:[%s242_s0] sm:$0xff]   ;;  %s71_s0 = smov 3  ;;  %s102_s12 = smov 12  ;;  %vm108_vm4 = vcmask 786048   ;;  %vm122_vm5 = vcmask 654848  }
   0x2   :  { %v190_v2 = vunpack.c.l.bf16 %v196_v0  ;;  %v191_v3 = vunpack.c.h.bf16 %v196_v0  ;;  %v194_v4 = vunpack.c.l.bf16 %v193_v1  ;;  %v195_v5 = vunpack.c.h.bf16 %v193_v1  ;;  %s85_s13 = smov 3  ;;  %s88_s14 = smov 12 }
   0x3   :  { %s113_s15 = smov 3  ;;  %s116_s16 = smov 12  ;;  %vm136_vm6 = vcmask 523648   ;;  %vm150_vm7 = vcmask 392448   ;;  %vm164_vm8 = vcmask 261248   ;;  %v212_v37 = vmov 0.0  }
   0x4   :  { %20 = vst [vmem:[#allocation1 + $0x18] sm:$0xff] %v191_v3  ;;  %36 = vst [vmem:[#allocation1 + $0x10] sm:$0xff] %v190_v2  ;;  %s127_s17 = smov 3  ;;  %s130_s18 = smov 12 }
   0x5   :  { %51 = vst [vmem:[#allocation1 + $0x8] sm:$0xff] %v195_v5  ;;  %64 = vst [vmem:[#allocation1] sm:$0xff] %v194_v4  ;;  %s141_s19 = smov 3  ;;  %s205_s20 = smov 112  }
   0x6   :  { %s144_s21 = smov 12  ;;  %s206_s22 = smov 80  }
   0x7   :  { %s155_s23 = smov 3  ;;  %s158_s24 = smov 12 }
   0x8   :  { %s207_s25 = smov 96   ;;  %s208_s26 = smov 64  }
   0x9   :  { %s209_s27 = smov 48   ;;  %s210_s28 = smov 32  }
   0xa   :  { %s211_s29 = smov 16  }
   0xc   :  { %v72_v6 = vld [vmem:[#allocation1 + $0x7] ss:$16 sm:%s71_s0]   ;;  %v75_v7 = vld [vmem:[#allocation1 - $0x11] ss:$16 sm:%s74_s10]   ;;  %v100_v8 = vld [vmem:[#allocation1 + $0x5] ss:$16 sm:%s99_s11]  }
   0xd   :  { %v77_v9 = vsel %vm76_vm0, %v75_v7, %v72_v6  ;;  %v103_v10 = vld [vmem:[#allocation1 - $0x13] ss:$16 sm:%s102_s12]   ;;  %v86_v11 = vld [vmem:[#allocation1 + $0x6] ss:$16 sm:%s85_s13]   ;;  %v89_v12 = vld [vmem:[#allocation1 - $0x12] ss:$16 sm:%s88_s14]  }
   0xe   :  { %78 = vrot.lane.b32.xlu0 %v77_v9, %s205_s20  ;;  %v105_v13 = vsel %vm76_vm0, %v103_v10, %v100_v8  ;;  %v114_v14 = vld [vmem:[#allocation1 + $0x4] ss:$16 sm:%s113_s15]   ;;  %v117_v15 = vld [vmem:[#allocation1 - $0x14] ss:$16 sm:%s116_s16]   ;;  %v91_v16 = vsel %vm76_vm0, %v89_v12, %v86_v11  ;;  %v128_v18 = vld [vmem:[#allocation1 + $0x3] ss:$16 sm:%s127_s17]  }
   0xf   :  { %106 = vrot.lane.b32.xlu1 %v105_v13, %s206_s22  ;;  %v119_v17 = vsel %vm76_vm0, %v117_v15, %v114_v14  ;;  %v131_v19 = vld [vmem:[#allocation1 - $0x15] ss:$16 sm:%s130_s18]   ;;  %v142_v20 = vld [vmem:[#allocation1 + $0x2] ss:$16 sm:%s141_s19]   ;;  %v145_v21 = vld [vmem:[#allocation1 - $0x16] ss:$16 sm:%s144_s21]  }
  0x10   :  { %v65_v22 = vld [vmem:[#allocation1] ss:$8 sm:$0xf]   ;;  %v133_v23 = vsel %vm76_vm0, %v131_v19, %v128_v18  ;;  %v147_v24 = vsel %vm76_vm0, %v145_v21, %v142_v20  ;;  %v156_v25 = vld [vmem:[#allocation1 + $0x1] ss:$16 sm:%s155_s23]  }
  0x11   :  { %67 = vst.msk [vmem:[#allocation0] ss:$8 sm:$0x3] %vm66_vm1, %v65_v22   ;;  %69 = vst.msk [vmem:[#allocation0 - $0xf] ss:$8 sm:$0xc] %vm66_vm1, %v65_v22  }
  0x12   :  { %92 = vrot.lane.b32.xlu0 %v91_v16, %s207_s25  ;;  %v159_v26 = vld [vmem:[#allocation1 - $0x17] ss:$16 sm:%s158_s24]  }
  0x13   :  { %120 = vrot.lane.b32.xlu1 %v119_v17, %s208_s26  ;;  %v161_v27 = vsel %vm76_vm0, %v159_v26, %v156_v25 }
  0x16   :  { %134 = vrot.lane.b32.xlu0 %v133_v23, %s209_s27 }
  0x17   :  { %148 = vrot.lane.b32.xlu1 %v147_v24, %s210_s28 }
  0x1a   :  { %162 = vrot.lane.b32.xlu0 %v161_v27, %s211_s29 }
  0x80   :  { %v79_v28 = vpop.permute.xlu0 %78  }
  0x81   :  { %81 = vst.msk [vmem:[#allocation0] sm:$0x3] %vm80_vm2, %v79_v28   ;;  %83 = vst.msk [vmem:[#allocation0 + $0x6] sm:$0xc] %vm80_vm2, %v79_v28   ;;  %v107_v29 = vpop.permute.xlu1 %106  }
  0x84   :  { %v93_v30 = vpop.permute.xlu0 %92  }
  0x85   :  { %95 = vst.msk [vmem:[#allocation0] sm:$0x3] %vm94_vm3, %v93_v30   ;;  %97 = vst.msk [vmem:[#allocation0 + $0x6] sm:$0xc] %vm94_vm3, %v93_v30   ;;  %v121_v31 = vpop.permute.xlu1 %120  }
  0x86   :  { %109 = vst.msk [vmem:[#allocation0] sm:$0x3] %vm108_vm4, %v107_v29   ;;  %111 = vst.msk [vmem:[#allocation0 + $0x6] sm:$0xc] %vm108_vm4, %v107_v29  }
  0x87   :  { %123 = vst.msk [vmem:[#allocation0] sm:$0x3] %vm122_vm5, %v121_v31   ;;  %125 = vst.msk [vmem:[#allocation0 + $0x6] sm:$0xc] %vm122_vm5, %v121_v31  }
  0x88   :  { %v135_v32 = vpop.permute.xlu0 %134  }
  0x89   :  { %137 = vst.msk [vmem:[#allocation0] sm:$0x3] %vm136_vm6, %v135_v32   ;;  %139 = vst.msk [vmem:[#allocation0 + $0x6] sm:$0xc] %vm136_vm6, %v135_v32   ;;  %v149_v33 = vpop.permute.xlu1 %148  }
  0x8a   :  { %151 = vst.msk [vmem:[#allocation0] sm:$0x3] %vm150_vm7, %v149_v33   ;;  %153 = vst.msk [vmem:[#allocation0 + $0x6] sm:$0xc] %vm150_vm7, %v149_v33  }
  0x8c   :  { %v163_v34 = vpop.permute.xlu0 %162  }
  0x8d   :  { %165 = vst.msk [vmem:[#allocation0] sm:$0x3] %vm164_vm8, %v163_v34   ;;  %167 = vst.msk [vmem:[#allocation0 + $0x6] sm:$0xc] %vm164_vm8, %v163_v34  }
  0x94   :  { %v172_v35 = vld [vmem:[#allocation0] sm:$0x3]  ;;  %v177_v36 = vld [vmem:[#allocation0 + $0x8] sm:$0x3] }
  0x95   :  { %v173_v38 = vpack.c.bf16 %v212_v37, %v172_v35  ;;  %v178_v39 = vpack.c.bf16 %v212_v37, %v177_v36 }
  0x97   :  { %175 = vst [vmem:[%s243_s1] sm:$0x1] %v173_v38  ;;  %187 = vst [vmem:[%s243_s1 + $0x1] sm:$0x1] %v178_v39 }

// kernel: cnn_forward.1
= control target key start
LH: loop header
LB: loop body
LE: loop exit
PB: predicated region body
PF: predicated region fallthrough
CT: control target
= control target key end

     0   :  { %vm202_vm0 = vcmask 1044480   ;;  %vm203_vm1 = vcmask 1045504   ;;  %v3327_v3 = vmov 65535   ;;  %v3328_v5 = vmov 0   ;;  %s4465_s0 = inlined_call_operand.vmem [shape: bf16[4,27,2048], index: 0, kind: input, shape index: {}]   ;;  %s4466_s1 = inlined_call_operand.vmem [shape: bf16[8,27], index: 1, kind: input, shape index: {}]   ;;  %s4467_s2 = inlined_call_operand.vmem [shape: f32[8,1], index: 2, kind: input, shape index: {}]   ;;  %s4468_s3 = inlined_call_operand.vmem [shape: f32[10,1536], index: 3, kind: input, shape index: {}]   ;;  %s4469_s4 = inlined_call_operand.vmem [shape: f32[1,10], index: 4, kind: input, shape index: {}]   ;;  %s4470_s5 = inlined_call_operand.vmem [shape: f32[8,10], index: 5, kind: output, shape index: {}]  }
   0x1   :  { %v22_v0 = vld [vmem:[%s4465_s0] sm:$0xff]  ;;  %v23_v2 = vld [vmem:[%s4465_s0 + $0x8] sm:$0xff]  ;;  %v204_v4 = vsel %vm202_vm0, 4294967295, %v3327_v3  ;;  %286 = vmatprep.mubr.bf16.mxu0 %v3328_v5  ;;  %327 = vmatprep.mubr.bf16.mxu1 %v3328_v5  ;;  %v24_v20 = vld [vmem:[%s4465_s0 + $0x10] sm:$0xff]  ;;  %vm198_vm2 = vcmask 220160   ;;  %vm3019_vm3 = vcmask 80896  }
   0x2   :  { %v30_v1 = vld [vmem:[%s4465_s0 + $0x40] sm:$0xff]  ;;  %v31_v7 = vld [vmem:[%s4465_s0 + $0x48] sm:$0xff]  ;;  %v3381_v11 = vsel %vm203_vm1, %v204_v4, 0  ;;  %3322 = vset.pattern.permute.xlu0 %v3328_v5  ;;  %v32_v21 = vld [vmem:[%s4465_s0 + $0x50] sm:$0xff] }
   0x3   :  { %v3038_v6 = vcombine.high %v22_v0, %v30_v1  ;;  %v3037_v8 = vcombine.low %v22_v0, %v30_v1  ;;  %v38_v9 = vld [vmem:[%s4465_s0 + $0x80] sm:$0xff]  ;;  %v3040_v12 = vcombine.high %v23_v2, %v31_v7  ;;  %v3039_v13 = vcombine.low %v23_v2, %v31_v7  ;;  %v39_v15 = vld [vmem:[%s4465_s0 + $0x88] sm:$0xff]  ;;  %v25_v22 = vld [vmem:[%s4465_s0 + $0x18] sm:$0xff] }
   0x4   :  { %v46_v10 = vld [vmem:[%s4465_s0 + $0xc0] sm:$0x33]  ;;  %v47_v16 = vld [vmem:[%s4465_s0 + $0xc8] sm:$0x33]  ;;  %v33_v25 = vld [vmem:[%s4465_s0 + $0x58] sm:$0xff]  ;;  %v3042_v30 = vcombine.high %v24_v20, %v32_v21  ;;  %v3041_v37 = vcombine.low %v24_v20, %v32_v21 }
   0x5   :  { %v3054_v14 = vcombine.high %v38_v9, %v46_v10  ;;  %v3053_v17 = vcombine.low %v38_v9, %v46_v10  ;;  %254 = vmatprep.subr.bf16.mxu0 %v3038_v6  ;;  %v3056_v18 = vcombine.high %v39_v15, %v47_v16  ;;  %v3055_v19 = vcombine.low %v39_v15, %v47_v16  ;;  %v40_v26 = vld [vmem:[%s4465_s0 + $0x90] sm:$0xff]  ;;  %v41_v31 = vld [vmem:[%s4465_s0 + $0x98] sm:$0xff]  ;;  %v3421_v36 = vld [vmem:[%s4466_s1] sm:$0xf] }
   0x6   :  { %295 = vmatprep.subr.bf16.mxu1 %v3040_v12  ;;  %255 = vmatpush1.bf16.msra.mxu0 %v3037_v8  ;;  %v48_v27 = vld [vmem:[%s4465_s0 + $0xd0] sm:$0x33]  ;;  %v49_v32 = vld [vmem:[%s4465_s0 + $0xd8] sm:$0x33]  ;;  %v3044_v33 = vcombine.high %v25_v22, %v33_v25  ;;  %v3043_v39 = vcombine.low %v25_v22, %v33_v25  ;;  %v26_v42 = vld [vmem:[%s4465_s0 + $0x20] sm:$0xff] }
   0x7   :  { %v210_v23 = vand.u32 %v3054_v14, %v3381_v11  ;;  %v207_v24 = vand.u32 %v3053_v17, %v3381_v11  ;;  %296 = vmatpush1.bf16.msra.mxu1 %v3039_v13  ;;  %v216_v28 = vand.u32 %v3056_v18, %v3381_v11  ;;  %v213_v29 = vand.u32 %v3055_v19, %v3381_v11  ;;  %v34_v43 = vld [vmem:[%s4465_s0 + $0x60] sm:$0xff]  ;;  %v27_v45 = vld [vmem:[%s4465_s0 + $0x28] sm:$0xff]  ;;  %v28_v62 = vld [vmem:[%s4465_s0 + $0x30] sm:$0xff] }
   0x8   :  { %v3058_v34 = vcombine.high %v40_v26, %v48_v27  ;;  %v3060_v35 = vcombine.high %v41_v31, %v49_v32  ;;  %v3057_v38 = vcombine.low %v40_v26, %v48_v27  ;;  %v3059_v41 = vcombine.low %v41_v31, %v49_v32  ;;  %v42_v46 = vld [vmem:[%s4465_s0 + $0xa0] sm:$0xff]  ;;  %v35_v48 = vld [vmem:[%s4465_s0 + $0x68] sm:$0xff]  ;;  %v36_v63 = vld [vmem:[%s4465_s0 + $0x70] sm:$0xff] }
   0x9   :  { %256 = vmatprep.subr.bf16.mxu0 %v210_v23  ;;  %297 = vmatprep.subr.bf16.mxu1 %v216_v28  ;;  %v50_v47 = vld [vmem:[%s4465_s0 + $0xe0] sm:$0x33]  ;;  %v43_v49 = vld [vmem:[%s4465_s0 + $0xa8] sm:$0xff]  ;;  %v3046_v53 = vcombine.high %v26_v42, %v34_v43  ;;  %v3048_v55 = vcombine.high %v27_v45, %v35_v48  ;;  %v3045_v57 = vcombine.low %v26_v42, %v34_v43  ;;  %v29_v1 = vld [vmem:[%s4465_s0 + $0x38] sm:$0xff] }
   0xa   :  { %257 = vmatpush1.bf16.msra.mxu0 %v207_v24  ;;  %v222_v40 = vand.u32 %v3058_v34, %v3381_v11  ;;  %v228_v44 = vand.u32 %v3060_v35, %v3381_v11  ;;  %v51_v50 = vld [vmem:[%s4465_s0 + $0xe8] sm:$0x33]  ;;  %v219_v51 = vand.u32 %v3057_v38, %v3381_v11  ;;  %v225_v52 = vand.u32 %v3059_v41, %v3381_v11  ;;  %v44_v2 = vld [vmem:[%s4465_s0 + $0xb0] sm:$0xff]  ;;  %v37_v4 = vld [vmem:[%s4465_s0 + $0x78] sm:$0xff] }
   0xb   :  { %298 = vmatpush1.bf16.msra.mxu1 %v213_v29  ;;  %336 = vmatprep.subr.bf16.mxu0 %v3042_v30  ;;  %v3062_v54 = vcombine.high %v42_v46, %v50_v47  ;;  %v3064_v56 = vcombine.high %v43_v49, %v51_v50  ;;  %v3061_v58 = vcombine.low %v42_v46, %v50_v47  ;;  %v52_v3 = vld [vmem:[%s4465_s0 + $0xf0] sm:$0x33]  ;;  %v45_v6 = vld [vmem:[%s4465_s0 + $0xb8] sm:$0xff]  ;;  %v3494_v16 = vld [vmem:[%s4465_s0 + $0x100] sm:$0xff] }
   0xc   :  { %377 = vmatprep.subr.bf16.mxu1 %v3044_v33  ;;  %v3047_v59 = vcombine.low %v27_v45, %v35_v48  ;;  %v3063_v61 = vcombine.low %v43_v49, %v51_v50  ;;  %v53_v7 = vld [vmem:[%s4465_s0 + $0xf8] sm:$0x33]  ;;  %v3050_v10 = vcombine.high %v28_v62, %v36_v63  ;;  %v3066_v12 = vcombine.high %v44_v2, %v52_v3  ;;  %v3093_v17 = vld [vmem:[%s4465_s0 + $0x180] sm:$0xff]  ;;  %v3094_v22 = vld [vmem:[%s4465_s0 + $0x188] sm:$0xff] }
   0xd   :  { %3069 = vmatmul.mubr.msk.bf16.vlgmr.msra.gmra.mrb[0].mxu0 %vm198_vm2, %v3421_v36  ;;  %v234_v60 = vand.u32 %v3062_v54, %v3381_v11  ;;  %v240_v0 = vand.u32 %v3064_v56, %v3381_v11  ;;  %v231_v8 = vand.u32 %v3061_v58, %v3381_v11  ;;  %v3052_v13 = vcombine.high %v29_v1, %v37_v4  ;;  %v3101_v18 = vld [vmem:[%s4465_s0 + $0x1c0] sm:$0x33]  ;;  %v3102_v23 = vld [vmem:[%s4465_s0 + $0x1c8] sm:$0x33]  ;;  %v3529_v31 = vld [vmem:[%s4465_s0 + $0x110] sm:$0xff] }
   0xe   :  { %3070 = vmatmul.mubr.msk.bf16.vlgmr.msra.gmra.mrb[0].mxu1 %vm198_vm2, %v3421_v36  ;;  %337 = vmatpush1.bf16.msra.mxu0 %v3041_v37  ;;  %v237_v9 = vand.u32 %v3063_v61, %v3381_v11  ;;  %v3065_v14 = vcombine.low %v44_v2, %v52_v3  ;;  %v3068_v15 = vcombine.high %v45_v6, %v53_v7  ;;  %v3505_v21 = vld [vmem:[%s4465_s0 + $0x140] sm:$0xff]  ;;  %v3517_v26 = vld [vmem:[%s4465_s0 + $0x108] sm:$0xff]  ;;  %v3534_v32 = vld [vmem:[%s4465_s0 + $0x150] sm:$0xff] }
   0xf   :  { %378 = vmatpush1.bf16.msra.mxu1 %v3043_v39  ;;  %338 = vmatprep.subr.bf16.mxu0 %v222_v40  ;;  %v3049_v19 = vcombine.low %v28_v62, %v36_v63  ;;  %v3067_v20 = vcombine.low %v45_v6, %v53_v7  ;;  %v3051_v24 = vcombine.low %v29_v1, %v37_v4  ;;  %v3522_v27 = vld [vmem:[%s4465_s0 + $0x148] sm:$0xff]  ;;  %v3539_v33 = vld [vmem:[%s4465_s0 + $0x280] sm:$0xff]  ;;  %v3566_v45 = vld [vmem:[%s4465_s0 + $0x118] sm:$0xff] }
  0x10   :  { %379 = vmatprep.subr.bf16.mxu1 %v228_v44  ;;  %368 = vmatprep.mubr.bf16.mxu0 %v3328_v5  ;;  %v246_v25 = vand.u32 %v3066_v12, %v3381_v11  ;;  %v252_v28 = vand.u32 %v3068_v15, %v3381_v11  ;;  %v243_v29 = vand.u32 %v3065_v14, %v3381_v11  ;;  %v3550_v39 = vld [vmem:[%s4465_s0 + $0x2c0] sm:$0x33]  ;;  %v3166_v40 = vld [vmem:[%s4465_s0 + $0x288] sm:$0xff]  ;;  %v3571_v46 = vld [vmem:[%s4465_s0 + $0x158] sm:$0xff] }
  0x11   :  { %409 = vmatprep.mubr.bf16.mxu1 %v3328_v5  ;;  %v3126_v30 = vcombine.high %v3093_v17, %v3101_v18  ;;  %v3109_v34 = vcombine.low %v3494_v16, %v3505_v21  ;;  %v3110_v35 = vcombine.high %v3494_v16, %v3505_v21  ;;  %v3125_v37 = vcombine.low %v3093_v17, %v3101_v18  ;;  %v3174_v41 = vld [vmem:[%s4465_s0 + $0x2c8] sm:$0x33]  ;;  %v3167_v54 = vld [vmem:[%s4465_s0 + $0x290] sm:$0xff]  ;;  %v3168_v61 = vld [vmem:[%s4465_s0 + $0x298] sm:$0xff] }
  0x12   :  { %339 = vmatpush1.bf16.msra.mxu0 %v219_v51  ;;  %v3127_v38 = vcombine.low %v3094_v22, %v3102_v23  ;;  %v249_v42 = vand.u32 %v3067_v20, %v3381_v11  ;;  %v3111_v43 = vcombine.low %v3517_v26, %v3522_v27  ;;  %v3128_v44 = vcombine.high %v3094_v22, %v3102_v23  ;;  %v3095_v51 = vld [vmem:[%s4465_s0 + $0x190] sm:$0xff]  ;;  %v3176_v62 = vld [vmem:[%s4465_s0 + $0x2d8] sm:$0x33]  ;;  %v3170_v17 = vld [vmem:[%s4465_s0 + $0x2a8] sm:$0xff] }
  0x13   :  { %380 = vmatpush1.bf16.msra.mxu1 %v225_v52  ;;  %418 = vmatprep.subr.bf16.mxu0 %v3046_v53  ;;  %v3112_v47 = vcombine.high %v3517_v26, %v3522_v27  ;;  %v3113_v48 = vcombine.low %v3529_v31, %v3534_v32  ;;  %v3114_v49 = vcombine.high %v3529_v31, %v3534_v32  ;;  %v3614_v1 = vld [vmem:[%s4465_s0 + $0x198] sm:$0xff]  ;;  %v3178_v18 = vld [vmem:[%s4465_s0 + $0x2e8] sm:$0x33]  ;;  %v3651_v22 = vld [vmem:[%s4465_s0 + $0x120] sm:$0xff] }
  0x14   :  { %459 = vmatprep.subr.bf16.mxu1 %v3048_v55  ;;  %v763_v50 = vand.u32 %v3126_v30, %v3381_v11  ;;  %v3197_v52 = vcombine.low %v3539_v33, %v3550_v39  ;;  %v3199_v53 = vcombine.low %v3166_v40, %v3174_v41  ;;  %v3175_v55 = vld [vmem:[%s4465_s0 + $0x2d0] sm:$0x33]  ;;  %v760_v56 = vand.u32 %v3125_v37, %v3381_v11  ;;  %v3619_v2 = vld [vmem:[%s4465_s0 + $0x1d8] sm:$0x33]  ;;  %v3656_v23 = vld [vmem:[%s4465_s0 + $0x160] sm:$0xff] }
  0x15   :  { %3071 = vmatmul.mubr.msk.bf16.vlgmr.msra.gmra.mrb[4].mxu0 %vm198_vm2, %v3421_v36  ;;  %v3115_v58 = vcombine.low %v3566_v45, %v3571_v46  ;;  %v769_v63 = vand.u32 %v3128_v44, %v3381_v11  ;;  %v3201_v7 = vcombine.low %v3167_v54, %v3175_v55  ;;  %v3203_v14 = vcombine.low %v3168_v61, %v3176_v62  ;;  %v3179_v16 = vld [vmem:[%s4465_s0 + $0x2f0] sm:$0x33]  ;;  %v3172_v21 = vld [vmem:[%s4465_s0 + $0x2b8] sm:$0xff]  ;;  %v3704_v44 = vld [vmem:[%s4465_s0 + $0x168] sm:$0xff] }
  0x16   :  { %3072 = vmatmul.mubr.msk.bf16.vlgmr.msra.gmra.mrb[4].mxu1 %vm198_vm2, %v3421_v36  ;;  %419 = vmatpush1.bf16.msra.mxu0 %v3045_v57  ;;  %v3595_v57 = vand.u32 %v3127_v38, %v3381_v11  ;;  %v3622_v3 = vand.u32 %v3197_v52, %v3381_v11  ;;  %v3625_v4 = vand.u32 %v3199_v53, %v3381_v11  ;;  %v3795_v32 = vld [vmem:[%s4465_s0 + $0x130] sm:$0xff] }
  0x17   :  { %460 = vmatpush1.bf16.msra.mxu1 %v3047_v59  ;;  %420 = vmatprep.subr.bf16.mxu0 %v234_v60  ;;  %v3103_v59 = vld [vmem:[%s4465_s0 + $0x1d0] sm:$0x33]  ;;  %v3200_v60 = vcombine.high %v3166_v40, %v3174_v41  ;;  %v3204_v15 = vcombine.high %v3168_v61, %v3176_v62  ;;  %v3132_v20 = vcombine.high %v3614_v1, %v3619_v2  ;;  %v3237_v61 = vld [vmem:[%s4465_s0 + $0x380] sm:$0xff] }
  0x18   :  { %461 = vmatprep.subr.bf16.mxu1 %v240_v0  ;;  %450 = vmatprep.mubr.bf16.mxu0 %v3328_v5  ;;  %v3116_v0 = vcombine.high %v3566_v45, %v3571_v46  ;;  %v3129_v12 = vcombine.low %v3095_v51, %v3103_v59  ;;  %v3673_v27 = vand.u32 %v3203_v14, %v3381_v11  ;;  %v3245_v62 = vld [vmem:[%s4465_s0 + $0x3c0] sm:$0x33] }
  0x19   :  { %491 = vmatprep.mubr.bf16.mxu1 %v3328_v5  ;;  %v3628_v6 = vand.u32 %v3200_v60, %v3381_v11  ;;  %v3670_v26 = vand.u32 %v3204_v15, %v3381_v11  ;;  %v3208_v37 = vcombine.high %v3170_v17, %v3178_v18  ;;  %v3117_v40 = vcombine.low %v3651_v22, %v3656_v23 }
  0x1a   :  { %421 = vmatpush1.bf16.msra.mxu0 %v231_v8  ;;  %v3202_v8 = vcombine.high %v3167_v54, %v3175_v55  ;;  %v3118_v53 = vcombine.high %v3651_v22, %v3656_v23  ;;  %v3105_v54 = vld [vmem:[%s4465_s0 + $0x1e0] sm:$0x33]  ;;  %v3269_v14 = vcombine.low %v3237_v61, %v3245_v62  ;;  %v3270_v15 = vcombine.high %v3237_v61, %v3245_v62  ;;  %v3834_v62 = vld [vmem:[%s4465_s0 + $0x178] sm:$0xff] }
  0x1b   :  { %462 = vmatpush1.bf16.msra.mxu1 %v237_v9  ;;  %500 = vmatprep.subr.bf16.mxu0 %v3050_v10  ;;  %v3169_v9 = vld [vmem:[%s4465_s0 + $0x2a0] sm:$0xff] }
  0x1c   :  { %541 = vmatprep.subr.bf16.mxu1 %v3052_v13  ;;  %v3177_v10 = vld [vmem:[%s4465_s0 + $0x2e0] sm:$0x33]  ;;  %v3130_v13 = vcombine.high %v3095_v51, %v3103_v59  ;;  %v3715_v51 = vand.u32 %v3208_v37, %v3381_v11  ;;  %v3806_v45 = vand.u32 %v3269_v14, %v3381_v11  ;;  %v3108_v14 = vld [vmem:[%s4465_s0 + $0x1f8] sm:$0x33] }
  0x1d   :  { %3073 = vmatmul.mubr.msk.bf16.vlgmr.msra.gmra.mrb[8].mxu0 %vm198_vm2, %v3421_v36  ;;  %v3206_v30 = vcombine.high %v3169_v9, %v3177_v10 }
  0x1e   :  { %3074 = vmatmul.mubr.msk.bf16.vlgmr.msra.gmra.mrb[8].mxu1 %vm198_vm2, %v3421_v36  ;;  %501 = vmatpush1.bf16.msra.mxu0 %v3049_v19  ;;  %v3131_v19 = vcombine.low %v3614_v1, %v3619_v2  ;;  %v775_v38 = vand.u32 %v3130_v13, %v3381_v11  ;;  %v3238_v2 = vld [vmem:[%s4465_s0 + $0x388] sm:$0xff] }
  0x1f   :  { %542 = vmatpush1.bf16.msra.mxu1 %v3051_v24  ;;  %502 = vmatprep.subr.bf16.mxu0 %v246_v25  ;;  %v3659_v24 = vand.u32 %v3202_v8, %v3381_v11  ;;  %v3662_v25 = vand.u32 %v3201_v7, %v3381_v11  ;;  %v3246_v7 = vld [vmem:[%s4465_s0 + $0x3c8] sm:$0x33] }
  0x20   :  { %543 = vmatprep.subr.bf16.mxu1 %v252_v28  ;;  %532 = vmatprep.mubr.bf16.mxu0 %v3328_v5  ;;  %v3205_v28 = vcombine.low %v3169_v9, %v3177_v10 }
  0x21   :  { %573 = vmatprep.mubr.bf16.mxu1 %v3328_v5 }
  0x22   :  { %503 = vmatpush1.bf16.msra.mxu0 %v243_v29  ;;  %v3171_v29 = vld [vmem:[%s4465_s0 + $0x2b0] sm:$0xff]  ;;  %v3692_v41 = vand.u32 %v3205_v28, %v3381_v11 }
  0x23   :  { %544 = vmatpush1.bf16.msra.mxu1 %v249_v42  ;;  %807 = vmatprep.subr.bf16.mxu0 %v3110_v35  ;;  %v3207_v35 = vcombine.low %v3170_v17, %v3178_v18  ;;  %v772_v42 = vand.u32 %v3129_v12, %v3381_v11  ;;  %v3209_v55 = vcombine.low %v3171_v29, %v3179_v16  ;;  %v3106_v12 = vld [vmem:[%s4465_s0 + $0x1e8] sm:$0x33]  ;;  %v3239_v17 = vld [vmem:[%s4465_s0 + $0x390] sm:$0xff] }
  0x24   :  { %848 = vmatprep.subr.bf16.mxu1 %v3112_v47  ;;  %v3709_v47 = vld [vmem:[%s4465_s0 + $0x1a0] sm:$0xff]  ;;  %v3210_v59 = vcombine.high %v3171_v29, %v3179_v16  ;;  %v3247_v28 = vld [vmem:[%s4465_s0 + $0x3d0] sm:$0x33]  ;;  %v3240_v29 = vld [vmem:[%s4465_s0 + $0x398] sm:$0xff] }
  0x25   :  { %3075 = vmatmul.mubr.msk.bf16.vlgmr.msra.gmra.mrb[12].mxu0 %vm198_vm2, %v3421_v36  ;;  %v3718_v52 = vand.u32 %v3207_v35, %v3381_v11  ;;  %v3752_v8 = vand.u32 %v3209_v55, %v3381_v11  ;;  %v3133_v10 = vcombine.low %v3709_v47, %v3105_v54  ;;  %v3134_v18 = vcombine.high %v3709_v47, %v3105_v54  ;;  %v3241_v54 = vld [vmem:[%s4465_s0 + $0x3a0] sm:$0xff] }
  0x26   :  { %3076 = vmatmul.mubr.msk.bf16.vlgmr.msra.gmra.mrb[12].mxu1 %vm198_vm2, %v3421_v36  ;;  %808 = vmatpush1.bf16.msra.mxu0 %v3109_v34  ;;  %v3180_v34 = vld [vmem:[%s4465_s0 + $0x2f8] sm:$0x33]  ;;  %v3803_v35 = vand.u32 %v3270_v15, %v3381_v11  ;;  %v3249_v55 = vld [vmem:[%s4465_s0 + $0x3e0] sm:$0x33] }
  0x27   :  { %849 = vmatpush1.bf16.msra.mxu1 %v3111_v43  ;;  %809 = vmatprep.subr.bf16.mxu0 %v763_v50  ;;  %v3699_v43 = vld [vmem:[%s4465_s0 + $0x128] sm:$0xff]  ;;  %v3712_v50 = vand.u32 %v3206_v30, %v3381_v11  ;;  %v3211_v60 = vcombine.low %v3172_v21, %v3180_v34  ;;  %v3212_v1 = vcombine.high %v3172_v21, %v3180_v34  ;;  %v3248_v30 = vld [vmem:[%s4465_s0 + $0x3d8] sm:$0x33] }
  0x28   :  { %850 = vmatprep.subr.bf16.mxu1 %v769_v63  ;;  %839 = vmatprep.mubr.bf16.mxu0 %v3328_v5  ;;  %v778_v63 = vand.u32 %v3131_v19, %v3381_v11  ;;  %v3271_v19 = vcombine.low %v3238_v2, %v3246_v7  ;;  %v3120_v31 = vcombine.high %v3699_v43, %v3704_v44  ;;  %v3819_v21 = vld [vmem:[%s4465_s0 + $0x138] sm:$0xff] }
  0x29   :  { %880 = vmatprep.mubr.bf16.mxu1 %v3328_v5  ;;  %v3755_v9 = vand.u32 %v3211_v60, %v3381_v11  ;;  %v3767_v13 = vand.u32 %v3212_v1, %v3381_v11  ;;  %v3273_v34 = vcombine.low %v3239_v17, %v3247_v28  ;;  %v3275_v47 = vcombine.low %v3240_v29, %v3248_v30  ;;  %v3242_v1 = vld [vmem:[%s4465_s0 + $0x3a8] sm:$0xff] }
  0x2a   :  { %810 = vmatpush1.bf16.msra.mxu0 %v760_v56  ;;  %v781_v56 = vand.u32 %v3132_v20, %v3381_v11  ;;  %v3272_v20 = vcombine.high %v3238_v2, %v3246_v7  ;;  %v3813_v37 = vand.u32 %v3271_v19, %v3381_v11  ;;  %v784_v60 = vand.u32 %v3133_v10, %v3381_v11  ;;  %v3848_v2 = vld [vmem:[%s4465_s0 + $0x1b0] sm:$0xff] }
  0x2b   :  { %851 = vmatpush1.bf16.msra.mxu1 %v3595_v57  ;;  %889 = vmatprep.subr.bf16.mxu0 %v3114_v49  ;;  %v3119_v49 = vcombine.low %v3699_v43, %v3704_v44  ;;  %v3749_v57 = vand.u32 %v3210_v59, %v3381_v11  ;;  %v787_v59 = vand.u32 %v3134_v18, %v3381_v11  ;;  %v3107_v7 = vld [vmem:[%s4465_s0 + $0x1f0] sm:$0x33] }
  0x2c   :  { %930 = vmatprep.subr.bf16.mxu1 %v3116_v0  ;;  %v3098_v0 = vld [vmem:[%s4465_s0 + $0x1a8] sm:$0xff]  ;;  %v3278_v18 = vcombine.high %v3241_v54, %v3249_v55  ;;  %v3243_v19 = vld [vmem:[%s4465_s0 + $0x3b0] sm:$0xff]  ;;  %v3123_v44 = vcombine.low %v3819_v21, %v3834_v62 }
  0x2d   :  { %3141 = vmatmul.mubr.msk.bf16.vlgmr.msra.gmra.mrb[16].mxu0 %vm198_vm2, %v3421_v36  ;;  %v3136_v46 = vcombine.high %v3098_v0, %v3106_v12  ;;  %v3135_v16 = vcombine.low %v3098_v0, %v3106_v12  ;;  %v3857_v0 = vand.u32 %v3273_v34, %v3381_v11  ;;  %v3100_v12 = vld [vmem:[%s4465_s0 + $0x1b8] sm:$0xff] }
  0x2e   :  { %3142 = vmatmul.mubr.msk.bf16.vlgmr.msra.gmra.mrb[16].mxu1 %vm198_vm2, %v3421_v36  ;;  %890 = vmatpush1.bf16.msra.mxu0 %v3113_v48  ;;  %v3800_v48 = vld [vmem:[%s4465_s0 + $0x170] sm:$0xff]  ;;  %v3252_v34 = vld [vmem:[%s4465_s0 + $0x3f8] sm:$0x33] }
  0x2f   :  { %931 = vmatpush1.bf16.msra.mxu1 %v3115_v58  ;;  %891 = vmatprep.subr.bf16.mxu0 %v775_v38  ;;  %v3810_v58 = vand.u32 %v3272_v20, %v3381_v11  ;;  %v3274_v38 = vcombine.high %v3239_v17, %v3247_v28  ;;  %v3122_v61 = vcombine.high %v3795_v32, %v3800_v48 }
  0x30   :  { %932 = vmatprep.subr.bf16.mxu1 %v781_v56  ;;  %921 = vmatprep.mubr.bf16.mxu0 %v3328_v5  ;;  %v3276_v56 = vcombine.high %v3240_v29, %v3248_v30  ;;  %v3277_v17 = vcombine.low %v3241_v54, %v3249_v55  ;;  %v790_v20 = vand.u32 %v3135_v16, %v3381_v11  ;;  %v2289_v54 = vld [vmem:[%s4467_s2] sm:$0xff] }
  0x31   :  { %962 = vmatprep.mubr.bf16.mxu1 %v3328_v5  ;;  %v3854_v10 = vand.u32 %v3274_v38, %v3381_v11  ;;  %v3124_v28 = vcombine.high %v3819_v21, %v3834_v62  ;;  %v3138_v16 = vcombine.high %v3848_v2, %v3107_v7  ;;  %v3896_v38 = vand.u32 %v3278_v18, %v3381_v11  ;;  %v3149_v62 = vld [vmem:[%s4465_s0 + $0x200] sm:$0xff] }
  0x32   :  { %892 = vmatpush1.bf16.msra.mxu0 %v772_v42  ;;  %v3250_v42 = vld [vmem:[%s4465_s0 + $0x3e8] sm:$0x33]  ;;  %v3870_v15 = vand.u32 %v3276_v56, %v3381_v11  ;;  %v3140_v55 = vcombine.high %v3100_v12, %v3108_v14  ;;  %v3121_v43 = vcombine.low %v3795_v32, %v3800_v48  ;;  %2292 = vperm.xlu0 %3322, %v2289_v54  }
  0x33   :  { %933 = vmatpush1.bf16.msra.mxu1 %v778_v63  ;;  %971 = vmatprep.subr.bf16.mxu0 %v3118_v53  ;;  %v3860_v63 = vand.u32 %v3275_v47, %v3381_v11  ;;  %v793_v53 = vand.u32 %v3136_v46, %v3381_v11  ;;  %v3279_v29 = vcombine.low %v3242_v1, %v3250_v42  ;;  %v3244_v46 = vld [vmem:[%s4465_s0 + $0x3b8] sm:$0xff] }
  0x34   :  { %1012 = vmatprep.subr.bf16.mxu1 %v3120_v31  ;;  %v3280_v30 = vcombine.high %v3242_v1, %v3250_v42  ;;  %v3251_v31 = vld [vmem:[%s4465_s0 + $0x3f0] sm:$0x33]  ;;  %v3899_v47 = vand.u32 %v3277_v17, %v3381_v11  ;;  %v3283_v1 = vcombine.low %v3244_v46, %v3252_v34  ;;  %v799_v32 = vand.u32 %v3138_v16, %v3381_v11 }
  0x35   :  { %3143 = vmatmul.mubr.msk.bf16.vlgmr.msra.gmra.mrb[20].mxu0 %vm198_vm2, %v3421_v36  ;;  %v3911_v23 = vand.u32 %v3279_v29, %v3381_v11  ;;  %v3282_v56 = vcombine.high %v3243_v19, %v3251_v31  ;;  %v3139_v48 = vcombine.low %v3100_v12, %v3108_v14 }
  0x36   :  { %3144 = vmatmul.mubr.msk.bf16.vlgmr.msra.gmra.mrb[20].mxu1 %vm198_vm2, %v3421_v36  ;;  %972 = vmatpush1.bf16.msra.mxu0 %v3117_v40  ;;  %v3908_v22 = vand.u32 %v3280_v30, %v3381_v11  ;;  %v3281_v40 = vcombine.low %v3243_v19, %v3251_v31  ;;  %v3927_v17 = vand.u32 %v3283_v1, %v3381_v11  ;;  %v3151_v31 = vld [vmem:[%s4465_s0 + $0x210] sm:$0xff] }
  0x37   :  { %1013 = vmatpush1.bf16.msra.mxu1 %v3119_v49  ;;  %973 = vmatprep.subr.bf16.mxu0 %v787_v59  ;;  %v3284_v49 = vcombine.high %v3244_v46, %v3252_v34  ;;  %v3137_v59 = vcombine.low %v3848_v2, %v3107_v7  ;;  %v3921_v42 = vand.u32 %v3282_v56, %v3381_v11  ;;  %v3157_v2 = vld [vmem:[%s4465_s0 + $0x240] sm:$0xff]  ;;  %v3158_v7 = vld [vmem:[%s4465_s0 + $0x248] sm:$0xff] }
  0x38   :  { %1014 = vmatprep.subr.bf16.mxu1 %v793_v53  ;;  %1003 = vmatprep.mubr.bf16.mxu0 %v3328_v5  ;;  %v3924_v53 = vand.u32 %v3281_v40, %v3381_v11  ;;  %v802_v14 = vand.u32 %v3139_v48, %v3381_v11  ;;  %v3182_v18 = vcombine.high %v3149_v62, %v3157_v2 }
  0x39   :  { %1044 = vmatprep.mubr.bf16.mxu1 %v3328_v5  ;;  %v3931_v21 = vand.u32 %v3284_v49, %v3381_v11  ;;  %v796_v12 = vand.u32 %v3137_v59, %v3381_v11  ;;  %v3198_v19 = vcombine.high %v3539_v33, %v3550_v39  ;;  %v3159_v33 = vld [vmem:[%s4465_s0 + $0x250] sm:$0xff]  ;;  %v3152_v39 = vld [vmem:[%s4465_s0 + $0x218] sm:$0xff] }
  0x3a   :  { %974 = vmatpush1.bf16.msra.mxu0 %v784_v60  ;;  %v805_v60 = vand.u32 %v3140_v55, %v3381_v11  ;;  %v3186_v46 = vcombine.high %v3151_v31, %v3159_v33  ;;  %v3185_v16 = vcombine.low %v3151_v31, %v3159_v33  ;;  %v3153_v55 = vld [vmem:[%s4465_s0 + $0x220] sm:$0xff] }
  0x3b   :  { %1015 = vmatpush1.bf16.msra.mxu1 %v790_v20  ;;  %1053 = vmatprep.subr.bf16.mxu0 %v3122_v61  ;;  %v3150_v61 = vld [vmem:[%s4465_s0 + $0x208] sm:$0xff]  ;;  %v1316_v30 = vand.u32 %v3198_v19, %v3381_v11  ;;  %v3160_v11 = vld [vmem:[%s4465_s0 + $0x258] sm:$0xff] }
  0x3c   :  { %1094 = vmatprep.subr.bf16.mxu1 %v3124_v28  ;;  %v3184_v20 = vcombine.high %v3150_v61, %v3158_v7  ;;  %v3181_v28 = vcombine.low %v3149_v62, %v3157_v2  ;;  %v3183_v29 = vcombine.low %v3150_v61, %v3158_v7  ;;  %v3188_v34 = vcombine.high %v3152_v39, %v3160_v11 }
  0x3d   :  { %3145 = vmatmul.mubr.msk.bf16.vlgmr.msra.gmra.mrb[24].mxu0 %vm198_vm2, %v3421_v36  ;;  %v3187_v54 = vcombine.low %v3152_v39, %v3160_v11  ;;  %v2564_v39 = vld [vmem:[%s4468_s3 + $0x8] sm:$0xff] }
  0x3e   :  { %3146 = vmatmul.mubr.msk.bf16.vlgmr.msra.gmra.mrb[24].mxu1 %vm198_vm2, %v3421_v36  ;;  %1054 = vmatpush1.bf16.msra.mxu0 %v3121_v43 }
  0x3f   :  { %1095 = vmatpush1.bf16.msra.mxu1 %v3123_v44  ;;  %1055 = vmatprep.subr.bf16.mxu0 %v799_v32 }
  0x40   :  { %1096 = vmatprep.subr.bf16.mxu1 %v805_v60  ;;  %1085 = vmatprep.mubr.bf16.mxu0 %v3328_v5 }
  0x41   :  { %1126 = vmatprep.mubr.bf16.mxu1 %v3328_v5 }
  0x42   :  { %1056 = vmatpush1.bf16.msra.mxu0 %v796_v12 }
  0x43   :  { %1097 = vmatpush1.bf16.msra.mxu1 %v802_v14  ;;  %1360 = vmatprep.subr.bf16.mxu0 %v3182_v18 }
  0x44   :  { %1401 = vmatprep.subr.bf16.mxu1 %v3184_v20 }
  0x45   :  { %3147 = vmatmul.mubr.msk.bf16.vlgmr.msra.gmra.mrb[28].mxu0 %vm198_vm2, %v3421_v36 }
  0x46   :  { %3148 = vmatmul.mubr.msk.bf16.vlgmr.msra.gmra.mrb[28].mxu1 %vm198_vm2, %v3421_v36  ;;  %1361 = vmatpush1.bf16.msra.mxu0 %v3181_v28 }
  0x47   :  { %1402 = vmatpush1.bf16.msra.mxu1 %v3183_v29  ;;  %1362 = vmatprep.subr.bf16.mxu0 %v1316_v30 }
  0x48   :  { %1403 = vmatprep.subr.bf16.mxu1 %v3628_v6  ;;  %1392 = vmatprep.mubr.bf16.mxu0 %v3328_v5  ;;  %v3161_v6 = vld [vmem:[%s4465_s0 + $0x260] sm:$0xff] }
  0x49   :  { %1433 = vmatprep.mubr.bf16.mxu1 %v3328_v5  ;;  %v3190_v40 = vcombine.high %v3153_v55, %v3161_v6  ;;  %v3189_v1 = vcombine.low %v3153_v55, %v3161_v6 }
  0x4a   :  { %1363 = vmatpush1.bf16.msra.mxu0 %v3622_v3  ;;  %v3154_v3 = vld [vmem:[%s4465_s0 + $0x228] sm:$0xff] }
  0x4b   :  { %1404 = vmatpush1.bf16.msra.mxu1 %v3625_v4  ;;  %1442 = vmatprep.subr.bf16.mxu0 %v3186_v46  ;;  %v3162_v4 = vld [vmem:[%s4465_s0 + $0x268] sm:$0xff] }
  0x4c   :  { %1483 = vmatprep.subr.bf16.mxu1 %v3188_v34  ;;  %v3192_v56 = vcombine.high %v3154_v3, %v3162_v4  ;;  %v3191_v43 = vcombine.low %v3154_v3, %v3162_v4  ;;  %v2566_v46 = vld [vmem:[%s4468_s3 + $0x68] sm:$0x3]  ;;  %v2567_v34 = vld [vmem:[%s4468_s3 + $0x10] sm:$0xff]  ;;  %v2563_v3 = vld [vmem:[%s4468_s3] sm:$0xff] }
  0x4d   :  { %3213 = vmatmul.mubr.msk.bf16.vlgmr.msra.gmra.mrb[32].mxu0 %vm198_vm2, %v3421_v36  ;;  %v3298_v55 = vpack.c.bf16 %v2566_v46, %v2564_v39  ;;  %v2565_v4 = vld [vmem:[%s4468_s3 + $0x60] sm:$0x3] }
  0x4e   :  { %3214 = vmatmul.mubr.msk.bf16.vlgmr.msra.gmra.mrb[32].mxu1 %vm198_vm2, %v3421_v36  ;;  %1443 = vmatpush1.bf16.msra.mxu0 %v3185_v16  ;;  %v2569_v16 = vld [vmem:[%s4468_s3 + $0x70] sm:$0x3] }
  0x4f   :  { %1484 = vmatpush1.bf16.msra.mxu1 %v3187_v54  ;;  %1444 = vmatprep.subr.bf16.mxu0 %v3659_v24  ;;  %v3155_v24 = vld [vmem:[%s4465_s0 + $0x230] sm:$0xff]  ;;  %v3296_v6 = vpack.c.bf16 %v2569_v16, %v2567_v34 }
  0x50   :  { %1485 = vmatprep.subr.bf16.mxu1 %v3670_v26  ;;  %1474 = vmatprep.mubr.bf16.mxu0 %v3328_v5  ;;  %v3163_v26 = vld [vmem:[%s4465_s0 + $0x270] sm:$0xff] }
  0x51   :  { %1515 = vmatprep.mubr.bf16.mxu1 %v3328_v5  ;;  %v3194_v44 = vcombine.high %v3155_v24, %v3163_v26  ;;  %v3193_v59 = vcombine.low %v3155_v24, %v3163_v26 }
  0x52   :  { %1445 = vmatpush1.bf16.msra.mxu0 %v3662_v25  ;;  %v3156_v25 = vld [vmem:[%s4465_s0 + $0x238] sm:$0xff] }
  0x53   :  { %1486 = vmatpush1.bf16.msra.mxu1 %v3673_v27  ;;  %1524 = vmatprep.subr.bf16.mxu0 %v3190_v40  ;;  %v3164_v27 = vld [vmem:[%s4465_s0 + $0x278] sm:$0xff] }
  0x54   :  { %1565 = vmatprep.subr.bf16.mxu1 %v3192_v56  ;;  %v3196_v49 = vcombine.high %v3156_v25, %v3164_v27  ;;  %v3195_v32 = vcombine.low %v3156_v25, %v3164_v27 }
  0x55   :  { %3215 = vmatmul.mubr.msk.bf16.vlgmr.msra.gmra.mrb[36].mxu0 %vm198_vm2, %v3421_v36 }
  0x56   :  { %3216 = vmatmul.mubr.msk.bf16.vlgmr.msra.gmra.mrb[36].mxu1 %vm198_vm2, %v3421_v36  ;;  %1525 = vmatpush1.bf16.msra.mxu0 %v3189_v1  ;;  %v3300_v1 = vpack.c.bf16 %v2565_v4, %v2563_v3 }
  0x57   :  { %1566 = vmatpush1.bf16.msra.mxu1 %v3191_v43  ;;  %1526 = vmatprep.subr.bf16.mxu0 %v3712_v50  ;;  %v3221_v50 = vld [vmem:[%s4465_s0 + $0x300] sm:$0xff] }
  0x58   :  { %1567 = vmatprep.subr.bf16.mxu1 %v3715_v51  ;;  %1556 = vmatprep.mubr.bf16.mxu0 %v3328_v5  ;;  %v3229_v51 = vld [vmem:[%s4465_s0 + $0x340] sm:$0xff] }
  0x59   :  { %1597 = vmatprep.mubr.bf16.mxu1 %v3328_v5  ;;  %v3254_v48 = vcombine.high %v3221_v50, %v3229_v51  ;;  %v3253_v62 = vcombine.low %v3221_v50, %v3229_v51  ;;  %v2789_v50 = vld [vmem:[%s4468_s3 + $0x98] sm:$0x3] }
  0x5a   :  { %1527 = vmatpush1.bf16.msra.mxu0 %v3692_v41  ;;  %v3222_v41 = vld [vmem:[%s4465_s0 + $0x308] sm:$0xff] }
  0x5b   :  { %1568 = vmatpush1.bf16.msra.mxu1 %v3718_v52  ;;  %1606 = vmatprep.subr.bf16.mxu0 %v3194_v44  ;;  %v3230_v52 = vld [vmem:[%s4465_s0 + $0x348] sm:$0xff] }
  0x5c   :  { %1647 = vmatprep.subr.bf16.mxu1 %v3196_v49  ;;  %v3256_v60 = vcombine.high %v3222_v41, %v3230_v52  ;;  %v3255_v2 = vcombine.low %v3222_v41, %v3230_v52  ;;  %v2712_v44 = vld [vmem:[%s4468_s3 + $0x28] sm:$0xff] }
  0x5d   :  { %3217 = vmatmul.mubr.msk.bf16.vlgmr.msra.gmra.mrb[40].mxu0 %vm198_vm2, %v3421_v36  ;;  %v2714_v49 = vld [vmem:[%s4468_s3 + $0x88] sm:$0x3] }
  0x5e   :  { %3218 = vmatmul.mubr.msk.bf16.vlgmr.msra.gmra.mrb[40].mxu1 %vm198_vm2, %v3421_v36  ;;  %1607 = vmatpush1.bf16.msra.mxu0 %v3193_v59  ;;  %v2787_v59 = vld [vmem:[%s4468_s3 + $0x38] sm:$0xff] }
  0x5f   :  { %1648 = vmatpush1.bf16.msra.mxu1 %v3195_v32  ;;  %1608 = vmatprep.subr.bf16.mxu0 %v3749_v57  ;;  %v3223_v57 = vld [vmem:[%s4465_s0 + $0x310] sm:$0xff]  ;;  %v3302_v32 = vpack.c.bf16 %v2714_v49, %v2712_v44  ;;  %v3306_v51 = vpack.c.bf16 %v2789_v50, %v2787_v59 }
  0x60   :  { %1649 = vmatprep.subr.bf16.mxu1 %v3767_v13  ;;  %1638 = vmatprep.mubr.bf16.mxu0 %v3328_v5  ;;  %v3231_v13 = vld [vmem:[%s4465_s0 + $0x350] sm:$0xff] }
  0x61   :  { %1679 = vmatprep.mubr.bf16.mxu1 %v3328_v5  ;;  %v3258_v61 = vcombine.high %v3223_v57, %v3231_v13  ;;  %v3257_v12 = vcombine.low %v3223_v57, %v3231_v13 }
  0x62   :  { %1609 = vmatpush1.bf16.msra.mxu0 %v3752_v8  ;;  %v3224_v8 = vld [vmem:[%s4465_s0 + $0x318] sm:$0xff] }
  0x63   :  { %1650 = vmatpush1.bf16.msra.mxu1 %v3755_v9  ;;  %1913 = vmatprep.subr.bf16.mxu0 %v3254_v48  ;;  %v3232_v9 = vld [vmem:[%s4465_s0 + $0x358] sm:$0xff] }
  0x64   :  { %1954 = vmatprep.subr.bf16.mxu1 %v3256_v60  ;;  %v3260_v7 = vcombine.high %v3224_v8, %v3232_v9  ;;  %v3259_v14 = vcombine.low %v3224_v8, %v3232_v9 }
  0x65   :  { %3219 = vmatmul.mubr.msk.bf16.vlgmr.msra.gmra.mrb[44].mxu0 %vm198_vm2, %v3421_v36 }
  0x66   :  { %3220 = vmatmul.mubr.msk.bf16.vlgmr.msra.gmra.mrb[44].mxu1 %vm198_vm2, %v3421_v36  ;;  %1914 = vmatpush1.bf16.msra.mxu0 %v3253_v62 }
  0x67   :  { %1955 = vmatpush1.bf16.msra.mxu1 %v3255_v2  ;;  %1915 = vmatprep.subr.bf16.mxu0 %v3803_v35  ;;  %v3225_v35 = vld [vmem:[%s4465_s0 + $0x320] sm:$0xff] }
  0x68   :  { %1956 = vmatprep.subr.bf16.mxu1 %v3810_v58  ;;  %1945 = vmatprep.mubr.bf16.mxu0 %v3328_v5  ;;  %v3233_v58 = vld [vmem:[%s4465_s0 + $0x360] sm:$0xff] }
  0x69   :  { %1986 = vmatprep.mubr.bf16.mxu1 %v3328_v5  ;;  %v3262_v18 = vcombine.high %v3225_v35, %v3233_v58  ;;  %v3261_v20 = vcombine.low %v3225_v35, %v3233_v58 }
  0x6a   :  { %1916 = vmatpush1.bf16.msra.mxu0 %v3806_v45  ;;  %v3226_v45 = vld [vmem:[%s4465_s0 + $0x328] sm:$0xff] }
  0x6b   :  { %1957 = vmatpush1.bf16.msra.mxu1 %v3813_v37  ;;  %1995 = vmatprep.subr.bf16.mxu0 %v3258_v61  ;;  %v3234_v37 = vld [vmem:[%s4465_s0 + $0x368] sm:$0xff] }
  0x6c   :  { %2036 = vmatprep.subr.bf16.mxu1 %v3260_v7  ;;  %v3264_v19 = vcombine.high %v3226_v45, %v3234_v37  ;;  %v3263_v28 = vcombine.low %v3226_v45, %v3234_v37 }
  0x6d   :  { %3285 = vmatmul.mubr.msk.bf16.vlgmr.msra.gmra.mrb[48].mxu0 %vm198_vm2, %v3421_v36 }
  0x6e   :  { %3286 = vmatmul.mubr.msk.bf16.vlgmr.msra.gmra.mrb[48].mxu1 %vm198_vm2, %v3421_v36  ;;  %1996 = vmatpush1.bf16.msra.mxu0 %v3257_v12 }
  0x6f   :  { %2037 = vmatpush1.bf16.msra.mxu1 %v3259_v14  ;;  %1997 = vmatprep.subr.bf16.mxu0 %v3854_v10  ;;  %v3227_v10 = vld [vmem:[%s4465_s0 + $0x330] sm:$0xff] }
  0x70   :  { %2038 = vmatprep.subr.bf16.mxu1 %v3870_v15  ;;  %2027 = vmatprep.mubr.bf16.mxu0 %v3328_v5  ;;  %v3235_v15 = vld [vmem:[%s4465_s0 + $0x370] sm:$0xff] }
  0x71   :  { %2068 = vmatprep.mubr.bf16.mxu1 %v3328_v5  ;;  %v3266_v29 = vcombine.high %v3227_v10, %v3235_v15  ;;  %v3265_v31 = vcombine.low %v3227_v10, %v3235_v15 }
  0x72   :  { %1998 = vmatpush1.bf16.msra.mxu0 %v3857_v0  ;;  %v3228_v0 = vld [vmem:[%s4465_s0 + $0x338] sm:$0xff] }
  0x73   :  { %2039 = vmatpush1.bf16.msra.mxu1 %v3860_v63  ;;  %2077 = vmatprep.subr.bf16.mxu0 %v3262_v18  ;;  %v3236_v63 = vld [vmem:[%s4465_s0 + $0x378] sm:$0xff] }
  0x74   :  { %2118 = vmatprep.subr.bf16.mxu1 %v3264_v19  ;;  %v3268_v30 = vcombine.high %v3228_v0, %v3236_v63  ;;  %v3267_v33 = vcombine.low %v3228_v0, %v3236_v63 }
  0x75   :  { %3287 = vmatmul.mubr.msk.bf16.vlgmr.msra.gmra.mrb[52].mxu0 %vm198_vm2, %v3421_v36 }
  0x76   :  { %3288 = vmatmul.mubr.msk.bf16.vlgmr.msra.gmra.mrb[52].mxu1 %vm198_vm2, %v3421_v36  ;;  %2078 = vmatpush1.bf16.msra.mxu0 %v3261_v20 }
  0x77   :  { %2119 = vmatpush1.bf16.msra.mxu1 %v3263_v28  ;;  %2079 = vmatprep.subr.bf16.mxu0 %v3896_v38 }
  0x78   :  { %2120 = vmatprep.subr.bf16.mxu1 %v3908_v22  ;;  %2109 = vmatprep.mubr.bf16.mxu0 %v3328_v5 }
  0x79   :  { %2150 = vmatprep.mubr.bf16.mxu1 %v3328_v5 }
  0x7a   :  { %2080 = vmatpush1.bf16.msra.mxu0 %v3899_v47 }
  0x7b   :  { %2121 = vmatpush1.bf16.msra.mxu1 %v3911_v23  ;;  %2159 = vmatprep.subr.bf16.mxu0 %v3266_v29 }
  0x7c   :  { %2200 = vmatprep.subr.bf16.mxu1 %v3268_v30 }
  0x7d   :  { %3289 = vmatmul.mubr.msk.bf16.vlgmr.msra.gmra.mrb[56].mxu0 %vm198_vm2, %v3421_v36 }
  0x7e   :  { %3290 = vmatmul.mubr.msk.bf16.vlgmr.msra.gmra.mrb[56].mxu1 %vm198_vm2, %v3421_v36  ;;  %2160 = vmatpush1.bf16.msra.mxu0 %v3265_v31 }
  0x7f   :  { %2201 = vmatpush1.bf16.msra.mxu1 %v3267_v33  ;;  %2161 = vmatprep.subr.bf16.mxu0 %v3921_v42 }
  0x80   :  { %2202 = vmatprep.subr.bf16.mxu1 %v3931_v21  ;;  %2191 = vmatprep.mubr.bf16.mxu0 %v3328_v5 }
  0x81   :  { %2232 = vmatprep.mubr.bf16.mxu1 %v3328_v5 }
  0x82   :  { %2162 = vmatpush1.bf16.msra.mxu0 %v3924_v53 }
  0x83   :  { %2203 = vmatpush1.bf16.msra.mxu1 %v3927_v17  ;;  %v2568_v17 = vld [vmem:[%s4468_s3 + $0x18] sm:$0xff] }
  0x84   :  { %3299 = vmatprep.subr.bf16.mxu1 %v3298_v55 }
  0x85   :  { %3291 = vmatmul.mubr.msk.bf16.vlgmr.msra.gmra.mrb[60].mxu0 %vm198_vm2, %v3421_v36 }
  0x86   :  { %3292 = vmatmul.mubr.msk.bf16.vlgmr.msra.gmra.mrb[60].mxu1 %vm198_vm2, %v3421_v36  ;;  %v2570_v36 = vld [vmem:[%s4468_s3 + $0x78] sm:$0x3] }
  0x87   :  { %v3294_v11 = vpack.c.bf16 %v2570_v36, %v2568_v17 }
  0x89   :  { %3295 = vmatprep.subr.bf16.mxu0 %v3294_v11 }
  0x8b   :  { %3297 = vmatpush1.bf16.xpose.msra.mxu0 %v3296_v6 }
  0x8c   :  { %3301 = vmatpush1.bf16.xpose.msra.mxu1 %v3300_v1  ;;  %3303 = vmatprep.subr.bf16.mxu0 %v3302_v32 }
  0x8d   :  { %3307 = vmatprep.subr.bf16.mxu1 %v3306_v51 }
  0xe0   :  { %v4124_v38 = vpop.f32.mrb[0].mxu0 }
  0xe1   :  { %v4126_v47 = vpop.f32.mrb[0].mxu1  ;;  %v4128_v22 = vpop.f32.mrb[1].mxu0 }
  0xe2   :  { %v4130_v23 = vpop.f32.mrb[1].mxu1  ;;  %v292_v42 = vpop.f32.mrb[2].mxu0 }
  0xe3   :  { %v333_v5 = vpop.f32.mrb[2].mxu1  ;;  %v293_v21 = vpop.f32.mrb[3].mxu0 }
  0xe4   :  { %v334_v53 = vpop.f32.mrb[3].mxu1 }
  0xe8   :  { %v4150_v54 = vpop.f32.mrb[4].mxu0 }
  0xe9   :  { %v4158_v40 = vpop.f32.mrb[4].mxu1  ;;  %v4160_v56 = vpop.f32.mrb[5].mxu0 }
  0xea   :  { %v4162_v43 = vpop.f32.mrb[5].mxu1  ;;  %v374_v24 = vpop.f32.mrb[6].mxu0 }
  0xeb   :  { %v415_v26 = vpop.f32.mrb[6].mxu1  ;;  %v375_v25 = vpop.f32.mrb[7].mxu0 }
  0xec   :  { %v416_v27 = vpop.f32.mrb[7].mxu1 }
  0xf0   :  { %v4176_v41 = vpop.f32.mrb[8].mxu0 }
  0xf1   :  { %v4178_v52 = vpop.f32.mrb[8].mxu1  ;;  %v4180_v48 = vpop.f32.mrb[9].mxu0 }
  0xf2   :  { %v4182_v60 = vpop.f32.mrb[9].mxu1  ;;  %v456_v62 = vpop.f32.mrb[10].mxu0 }
  0xf3   :  { %v497_v2 = vpop.f32.mrb[10].mxu1  ;;  %v457_v57 = vpop.f32.mrb[11].mxu0 }
  0xf4   :  { %v498_v13 = vpop.f32.mrb[11].mxu1 }
  0xf8   :  { %v4184_v8 = vpop.f32.mrb[12].mxu0 }
  0xf9   :  { %v4186_v9 = vpop.f32.mrb[12].mxu1  ;;  %v4188_v61 = vpop.f32.mrb[13].mxu0 }
  0xfa   :  { %v4190_v7 = vpop.f32.mrb[13].mxu1  ;;  %v538_v12 = vpop.f32.mrb[14].mxu0 }
  0xfb   :  { %v579_v14 = vpop.f32.mrb[14].mxu1  ;;  %v539_v35 = vpop.f32.mrb[15].mxu0 }
  0xfc   :  { %v580_v58 = vpop.f32.mrb[15].mxu1 }
 0x100   :  { %v4192_v45 = vpop.f32.mrb[16].mxu0 }
 0x101   :  { %v2241_v37 = vmax.f32 %v4124_v38, %v4192_v45  ;;  %v4196_v18 = vpop.f32.mrb[16].mxu1  ;;  %v4198_v19 = vpop.f32.mrb[17].mxu0  ;;  %v2332_v38 = vlaneseq }
 0x102   :  { %v4204_v10 = vpop.f32.mrb[17].mxu1  ;;  %v845_v15 = vpop.f32.mrb[18].mxu0 }
 0x103   :  { %v886_v63 = vpop.f32.mrb[18].mxu1  ;;  %v846_v29 = vpop.f32.mrb[19].mxu0 }
 0x104   :  { %v887_v30 = vpop.f32.mrb[19].mxu1  ;;  %v4286_v45 = vpop.permute.xlu0 %2292 }
 0x108   :  { %v4208_v31 = vpop.f32.mrb[20].mxu0 }
 0x109   :  { %v4212_v42 = vpop.f32.mrb[20].mxu1  ;;  %v4214_v5 = vpop.f32.mrb[21].mxu0 }
 0x10a   :  { %v4220_v17 = vpop.f32.mrb[21].mxu1  ;;  %v927_v36 = vpop.f32.mrb[22].mxu0 }
 0x10b   :  { %v968_v11 = vpop.f32.mrb[22].mxu1  ;;  %v928_v46 = vpop.f32.mrb[23].mxu0 }
 0x10c   :  { %v969_v34 = vpop.f32.mrb[23].mxu1 }
 0x110   :  { %v4224_v16 = vpop.f32.mrb[24].mxu0 }
 0x111   :  { %v4228_v6 = vpop.f32.mrb[24].mxu1  ;;  %v4230_v3 = vpop.f32.mrb[25].mxu0 }
 0x112   :  { %v4236_v24 = vpop.f32.mrb[25].mxu1  ;;  %v1009_v26 = vpop.f32.mrb[26].mxu0 }
 0x113   :  { %v1050_v27 = vpop.f32.mrb[26].mxu1  ;;  %v1010_v44 = vpop.f32.mrb[27].mxu0 }
 0x114   :  { %v1051_v49 = vpop.f32.mrb[27].mxu1 }
 0x118   :  { %v4240_v59 = vpop.f32.mrb[28].mxu0 }
 0x119   :  { %v4244_v50 = vpop.f32.mrb[28].mxu1  ;;  %v4246_v51 = vpop.f32.mrb[29].mxu0 }
 0x11a   :  { %v4252_v57 = vpop.f32.mrb[29].mxu1  ;;  %v1091_v13 = vpop.f32.mrb[30].mxu0 }
 0x11b   :  { %4472 = vst [vmem:[#allocation2_spill] sm:$0xff] %v4252_v57  ;;  %v1132_v14 = vpop.f32.mrb[30].mxu1  ;;  %v1092_v35 = vpop.f32.mrb[31].mxu0 }
 0x11c   :  { %v1133_v58 = vpop.f32.mrb[31].mxu1 }
 0x120   :  { %v1394_v15 = vpop.f32.mrb[32].mxu0 }
 0x121   :  { %v1435_v63 = vpop.f32.mrb[32].mxu1  ;;  %v1396_v29 = vpop.f32.mrb[33].mxu0 }
 0x122   :  { %v1437_v30 = vpop.f32.mrb[33].mxu1  ;;  %v1398_v36 = vpop.f32.mrb[34].mxu0 }
 0x123   :  { %v1439_v11 = vpop.f32.mrb[34].mxu1  ;;  %v1399_v46 = vpop.f32.mrb[35].mxu0 }
 0x124   :  { %v1440_v34 = vpop.f32.mrb[35].mxu1 }
 0x128   :  { %v1476_v26 = vpop.f32.mrb[36].mxu0 }
 0x129   :  { %v1517_v27 = vpop.f32.mrb[36].mxu1  ;;  %v1478_v44 = vpop.f32.mrb[37].mxu0 }
 0x12a   :  { %v4256_v49 = vpop.f32.mrb[37].mxu1  ;;  %v1480_v13 = vpop.f32.mrb[38].mxu0 }
 0x12b   :  { %v1521_v2 = vpop.f32.mrb[38].mxu1  ;;  %v1481_v62 = vpop.f32.mrb[39].mxu0 }
 0x12c   :  { %v1522_v12 = vpop.f32.mrb[39].mxu1 }
 0x130   :  { %v4258_v14 = vpop.f32.mrb[40].mxu0 }
 0x131   :  { %v4260_v35 = vpop.f32.mrb[40].mxu1  ;;  %v4262_v58 = vpop.f32.mrb[41].mxu0 }
 0x132   :  { %v4264_v32 = vpop.f32.mrb[41].mxu1  ;;  %v1562_v36 = vpop.f32.mrb[42].mxu0 }
 0x133   :  { %v1603_v11 = vpop.f32.mrb[42].mxu1  ;;  %v1563_v46 = vpop.f32.mrb[43].mxu0 }
 0x134   :  { %v1604_v34 = vpop.f32.mrb[43].mxu1 }
 0x138   :  { %v4266_v25 = vpop.f32.mrb[44].mxu0 }
 0x139   :  { %v4268_v1 = vpop.f32.mrb[44].mxu1  ;;  %v4270_v13 = vpop.f32.mrb[45].mxu0 }
 0x13a   :  { %v4272_v62 = vpop.f32.mrb[45].mxu1  ;;  %v1644_v2 = vpop.f32.mrb[46].mxu0 }
 0x13b   :  { %v1685_v12 = vpop.f32.mrb[46].mxu1  ;;  %v1645_v4 = vpop.f32.mrb[47].mxu0  ;;  %v4473_v2 = vmax.f32 %v4126_v47, %v4196_v18  ;;  %v4288_v18 = vshrl.u32 %v2332_v38, 7 }
 0x13c   :  { %v1686_v55 = vpop.f32.mrb[47].mxu1 }
 0x140   :  { %v1947_v39 = vpop.f32.mrb[48].mxu0 }
 0x141   :  { %v2257_v53 = vmax.f32 %v1394_v15, %v1947_v39  ;;  %v1988_v21 = vpop.f32.mrb[48].mxu1  ;;  %v1949_v33 = vpop.f32.mrb[49].mxu0  ;;  %v4474_v39 = vmax.f32 %v4128_v22, %v4198_v19 }
 0x142   :  { %v2259_v36 = vmax.f32 %v1435_v63, %v1988_v21  ;;  %v2258_v11 = vmax.f32 %v1396_v29, %v1949_v33  ;;  %v1990_v46 = vpop.f32.mrb[49].mxu1  ;;  %v1951_v34 = vpop.f32.mrb[50].mxu0  ;;  %v4475_v33 = vmax.f32 %v4130_v23, %v4204_v10  ;;  %v3329_v63 = vmov 1983009808  }
 0x143   :  { %v2273_v0 = vmax.f32 %v2241_v37, %v2257_v53  ;;  %v2260_v28 = vmax.f32 %v1437_v30, %v1990_v46  ;;  %v1992_v20 = vpop.f32.mrb[50].mxu1  ;;  %v1952_v57 = vpop.f32.mrb[51].mxu0  ;;  %v2330_v29 = vunpack.c.l.s4 %v3329_v63  ;;  %v4476_v23 = vmax.f32 %v4150_v54, %v4208_v31 }
 0x144   :  { %v2275_v4 = vmax.f32 %v4473_v2, %v2259_v36  ;;  %v2274_v55 = vmax.f32 %v4474_v39, %v2258_v11  ;;  %v1993_v15 = vpop.f32.mrb[51].mxu1  ;;  %v4477_v34 = vmax.f32 %v4158_v40, %v4212_v42 }
 0x145   :  { %v2276_v21 = vmax.f32 %v4475_v33, %v2260_v28  ;;  %v2331_v47 = vunpack.c.0.s8 %v2330_v29  ;;  %v2295_v10 = vadd.f32 %v4286_v45, %v2273_v0 }
 0x146   :  { %v2297_v36 = vadd.f32 %v4286_v45, %v2275_v4  ;;  %v2296_v39 = vadd.f32 %v4286_v45, %v2274_v55 }
 0x147   :  { %v2298_v54 = vadd.f32 %v4286_v45, %v2276_v21  ;;  %v4309_v15 = vsub.s32 %v2331_v47, %v4288_v18 }
 0x148   :  { %v2029_v37 = vpop.f32.mrb[52].mxu0  ;;  %v2313_v33 = vmax.f32 %v2297_v36, 0.0  ;;  %v2312_v63 = vmax.f32 %v2296_v39, 0.0 }
 0x149   :  { %v2261_v20 = vmax.f32 %v1476_v26, %v2029_v37  ;;  %v2070_v53 = vpop.f32.mrb[52].mxu1  ;;  %v2031_v57 = vpop.f32.mrb[53].mxu0  ;;  %v2314_v38 = vmax.f32 %v2298_v54, 0.0  ;;  %v4480_v54 = vmax.f32 %v4176_v41, %v4224_v16 }
 0x14a   :  { %v2263_v30 = vmax.f32 %v1517_v27, %v2070_v53  ;;  %v2262_v22 = vmax.f32 %v1478_v44, %v2031_v57  ;;  %v2072_v19 = vpop.f32.mrb[53].mxu1  ;;  %v2033_v12 = vpop.f32.mrb[54].mxu0  ;;  %v4478_v27 = vmax.f32 %v4160_v56, %v4214_v5  ;;  %v2311_v56 = vmax.f32 %v2295_v10, 0.0 }
 0x14b   :  { %v2277_v28 = vmax.f32 %v4476_v23, %v2261_v20  ;;  %v2264_v11 = vmax.f32 %v4256_v49, %v2072_v19  ;;  %v2074_v26 = vpop.f32.mrb[54].mxu1  ;;  %v2034_v46 = vpop.f32.mrb[55].mxu0  ;;  %v4479_v49 = vmax.f32 %v4162_v43, %v4220_v17 }
 0x14c   :  { %v2279_v2 = vmax.f32 %v4477_v34, %v2263_v30  ;;  %v2278_v44 = vmax.f32 %v4478_v27, %v2262_v22  ;;  %v2075_v31 = vpop.f32.mrb[55].mxu1 }
 0x14d   :  { %v2299_v0 = vadd.f32 %v4286_v45, %v2277_v28  ;;  %v2280_v4 = vmax.f32 %v4479_v49, %v2264_v11  ;;  %v3330_v49 = vmov 1934713408  }
 0x14e   :  { %v2301_v40 = vadd.f32 %v4286_v45, %v2279_v2  ;;  %v2300_v42 = vadd.f32 %v4286_v45, %v2278_v44 }
 0x14f   :  { %v2315_v5 = vmax.f32 %v2299_v0, 0.0  ;;  %v2302_v55 = vadd.f32 %v4286_v45, %v2280_v4  ;;  %v2394_v4 = vunpack.c.l.s4 %v3330_v49 }
 0x150   :  { %v2317_v21 = vmax.f32 %v2301_v40, 0.0  ;;  %v2316_v29 = vmax.f32 %v2300_v42, 0.0  ;;  %v2111_v37 = vpop.f32.mrb[56].mxu0 }
 0x151   :  { %v2327_v20 = vcombine.low %v2311_v56, %v2315_v5  ;;  %v2328_v43 = vcombine.high %v2311_v56, %v2315_v5  ;;  %v2318_v17 = vmax.f32 %v2302_v55, 0.0  ;;  %v2265_v53 = vmax.f32 %v4258_v14, %v2111_v37  ;;  %v2152_v57 = vpop.f32.mrb[56].mxu1  ;;  %v2113_v47 = vpop.f32.mrb[57].mxu0 }
 0x152   :  { %v2343_v30 = vcombine.low %v2313_v33, %v2317_v21  ;;  %v2344_v22 = vcombine.high %v2313_v33, %v2317_v21  ;;  %v2445_v19 = vcombine.low %v2312_v63, %v2316_v29  ;;  %v2446_v12 = vcombine.high %v2312_v63, %v2316_v29  ;;  %v2154_v23 = vpop.f32.mrb[57].mxu1  ;;  %v2115_v28 = vpop.f32.mrb[58].mxu0 }
 0x153   :  { %v4316_v10 = vrot.slane %v2327_v20, %v4309_v15  ;;  %v2342_v36 = vrot.slane %v2328_v43, %v4309_v15  ;;  %v2461_v11 = vcombine.low %v2314_v38, %v2318_v17  ;;  %v2462_v26 = vcombine.high %v2314_v38, %v2318_v17  ;;  %v2156_v46 = vpop.f32.mrb[58].mxu1  ;;  %v2116_v34 = vpop.f32.mrb[59].mxu0  ;;  %v4385_v28 = vld [vmem:[%s4468_s3 + $0x30] sm:$0xff] }
 0x154   :  { %v4320_v2 = vrot.slane %v2343_v30, %v4309_v15  ;;  %v2358_v14 = vrot.slane %v2344_v22, %v4309_v15  ;;  %v4324_v27 = vrot.slane %v2445_v19, %v4309_v15  ;;  %v2157_v44 = vpop.f32.mrb[59].mxu1  ;;  %v2281_v31 = vmax.f32 %v4480_v54, %v2265_v53 }
 0x155   :  { %v4327_v39 = vrot.slane %v2461_v11, %v4309_v15  ;;  %v2267_v0 = vmax.f32 %v4260_v35, %v2152_v57  ;;  %v2266_v5 = vmax.f32 %v4262_v58, %v2113_v47  ;;  %v4481_v33 = vmax.f32 %v4178_v52, %v4228_v6 }
 0x156   :  { %v2391_v40 = vcombine.low %v4316_v10, %v4320_v2  ;;  %v2392_v42 = vcombine.high %v4316_v10, %v4320_v2  ;;  %v4337_v56 = vcombine.low %v2342_v36, %v2358_v14  ;;  %v2268_v41 = vmax.f32 %v4264_v32, %v2154_v23  ;;  %v4390_v36 = vld [vmem:[%s4468_s3 + $0x90] sm:$0x3] }
 0x157   :  { %v2283_v55 = vmax.f32 %v4481_v33, %v2267_v0  ;;  %v2509_v16 = vcombine.low %v4324_v27, %v4327_v39  ;;  %v4482_v35 = vmax.f32 %v4180_v48, %v4230_v3  ;;  %v2510_v29 = vcombine.high %v4324_v27, %v4327_v39  ;;  %v2864_v39 = vld [vmem:[%s4468_s3 + $0xa8] sm:$0x3] }
 0x158   :  { %v2193_v63 = vpop.f32.mrb[60].mxu0  ;;  %v2460_v38 = vrot.slane %v2446_v12, %v4309_v15  ;;  %v2476_v58 = vrot.slane %v2462_v26, %v4309_v15  ;;  %v4483_v52 = vmax.f32 %v4182_v60, %v4236_v24  ;;  %v2395_v53 = vunpack.c.0.s8 %v2394_v4 }
 0x159   :  { %v2282_v21 = vmax.f32 %v4482_v35, %v2266_v5  ;;  %v2269_v32 = vmax.f32 %v4266_v25, %v2193_v63  ;;  %v2234_v37 = vpop.f32.mrb[60].mxu1  ;;  %v2195_v20 = vpop.f32.mrb[61].mxu0  ;;  %v2303_v57 = vadd.f32 %v4286_v45, %v2281_v31  ;;  %v4484_v47 = vmax.f32 %v4184_v8, %v4240_v59  ;;  %v4367_v25 = vld [vmem:[%s4468_s3 + $0x20] sm:$0xff] }
 0x15a   :  { %v2284_v6 = vmax.f32 %v4483_v52, %v2268_v41  ;;  %v2271_v43 = vmax.f32 %v4268_v1, %v2234_v37  ;;  %v2270_v48 = vmax.f32 %v4270_v13, %v2195_v20  ;;  %v2236_v3 = vpop.f32.mrb[61].mxu1  ;;  %v2197_v17 = vpop.f32.mrb[62].mxu0  ;;  %v4372_v1 = vld [vmem:[%s4468_s3 + $0x80] sm:$0x3]  ;;  %v2305_v13 = vadd.f32 %v4286_v45, %v2283_v55 }
 0x15b   :  { %v2285_v30 = vmax.f32 %v4484_v47, %v2269_v32  ;;  %v2272_v60 = vmax.f32 %v4272_v62, %v2236_v3  ;;  %v2238_v24 = vpop.f32.mrb[62].mxu1  ;;  %v2198_v22 = vpop.f32.mrb[63].mxu0  ;;  %v2304_v19 = vadd.f32 %v4286_v45, %v2282_v21  ;;  %v4485_v8 = vmax.f32 %v4186_v9, %v4244_v50  ;;  %v4487_v50 = vld [vmem:[#allocation2_spill] sm:$0xff] }
 0x15c   :  { %v4486_v62 = vmax.f32 %v4188_v61, %v4246_v51  ;;  %v2239_v23 = vpop.f32.mrb[63].mxu1  ;;  %v2306_v11 = vadd.f32 %v4286_v45, %v2284_v6  ;;  %v4488_v26 = vmax.f32 %v4190_v7, %v4487_v50  ;;  %v2525_v51 = vcombine.low %v2460_v38, %v2476_v58 }
 0x15d   :  { %v2287_v59 = vmax.f32 %v4485_v8, %v2271_v43  ;;  %v2307_v9 = vadd.f32 %v4286_v45, %v2285_v30  ;;  %v2398_v14 = vsub.s32 %v2395_v53, %v4288_v18  ;;  %v3304_v44 = vpack.c.bf16 %v4372_v1, %v4367_v25  ;;  %v2936_v25 = vld [vmem:[%s4468_s3 + $0x50] sm:$0xff] }
 0x15e   :  { %v2286_v12 = vmax.f32 %v4486_v62, %v2270_v48  ;;  %v2288_v61 = vmax.f32 %v4488_v26, %v2272_v60  ;;  %v2319_v54 = vmax.f32 %v2303_v57, 0.0  ;;  %v3308_v49 = vpack.c.bf16 %v4390_v36, %v4385_v28  ;;  %v2862_v62 = vld [vmem:[%s4468_s3 + $0x48] sm:$0xff]  ;;  %v2938_v1 = vld [vmem:[%s4468_s3 + $0xb0] sm:$0x3] }
 0x15f   :  { %v2309_v46 = vadd.f32 %v4286_v45, %v2287_v59  ;;  %v2323_v31 = vmax.f32 %v2307_v9, 0.0  ;;  %v2321_v4 = vmax.f32 %v2305_v13, 0.0  ;;  %v2320_v7 = vmax.f32 %v2304_v19, 0.0 }
 0x160   :  { %v2308_v34 = vadd.f32 %v4286_v45, %v2286_v12  ;;  %v2310_v0 = vadd.f32 %v4286_v45, %v2288_v61  ;;  %v2322_v55 = vmax.f32 %v2306_v11, 0.0  ;;  %v2399_v53 = vrot.slane %v2391_v40, %v2398_v14 }
 0x161   :  { %v2325_v5 = vmax.f32 %v2309_v46, 0.0  ;;  %v2359_v41 = vcombine.low %v2319_v54, %v2323_v31  ;;  %v2360_v35 = vcombine.high %v2319_v54, %v2323_v31  ;;  %v2406_v57 = vrot.slane %v2392_v42, %v2398_v14 }
 0x162   :  { %v2324_v33 = vmax.f32 %v2308_v34, 0.0  ;;  %v2326_v21 = vmax.f32 %v2310_v0, 0.0  ;;  %v2517_v24 = vrot.slane %v2509_v16, %v2398_v14  ;;  %v2414_v59 = vrot.slane %v4337_v56, %v2398_v14  ;;  %v2937_v56 = vld [vmem:[%s4468_s3 + $0x58] sm:$0xff] }
 0x163   :  { %v2375_v63 = vcombine.low %v2321_v4, %v2325_v5  ;;  %v2376_v18 = vcombine.high %v2321_v4, %v2325_v5  ;;  %v2367_v52 = vrot.slane %v2359_v41, %v4309_v15  ;;  %v2374_v6 = vrot.slane %v2360_v35, %v4309_v15  ;;  %v2861_v4 = vld [vmem:[%s4468_s3 + $0x40] sm:$0xff] }
 0x164   :  { %v2477_v38 = vcombine.low %v2320_v7, %v2324_v33  ;;  %v2478_v58 = vcombine.high %v2320_v7, %v2324_v33  ;;  %v2493_v45 = vcombine.low %v2322_v55, %v2326_v21  ;;  %v2494_v32 = vcombine.high %v2322_v55, %v2326_v21  ;;  %v2863_v7 = vld [vmem:[%s4468_s3 + $0xa0] sm:$0x3] }
 0x165   :  { %v2383_v37 = vrot.slane %v2375_v63, %v4309_v15  ;;  %v2390_v20 = vrot.slane %v2376_v18, %v4309_v15  ;;  %v2532_v12 = vrot.slane %v2525_v51, %v2398_v14  ;;  %v3310_v31 = vpack.c.bf16 %v2864_v39, %v2862_v62 }
 0x166   :  { %v2485_v43 = vrot.slane %v2477_v38, %v4309_v15  ;;  %v2492_v48 = vrot.slane %v2478_v58, %v4309_v15  ;;  %v2501_v3 = vrot.slane %v2493_v45, %v4309_v15  ;;  %v2508_v17 = vrot.slane %v2494_v32, %v4309_v15 }
 0x167   :  { %v2415_v47 = vcombine.low %v2367_v52, %v2383_v37  ;;  %v2416_v30 = vcombine.high %v2367_v52, %v2383_v37  ;;  %v2431_v60 = vcombine.low %v2374_v6, %v2390_v20  ;;  %v2524_v15 = vrot.slane %v2510_v29, %v2398_v14  ;;  %v2939_v29 = vld [vmem:[%s4468_s3 + $0xb8] sm:$0x3]  ;;  %v3293_v37 = vld [vmem:[%s4469_s4] ss:$0 sm:$0xff] }
 0x168   :  { %v2533_v22 = vcombine.low %v2485_v43, %v2501_v3  ;;  %v2534_v13 = vcombine.high %v2485_v43, %v2501_v3  ;;  %v2549_v19 = vcombine.low %v2492_v48, %v2508_v17  ;;  %v3314_v0 = vpack.c.bf16 %v2939_v29, %v2937_v56 }
 0x169   :  { %v2423_v8 = vrot.slane %v2415_v47, %v2398_v14  ;;  %v2430_v40 = vrot.slane %v2416_v30, %v2398_v14  ;;  %v2438_v10 = vrot.slane %v2431_v60, %v2398_v14  ;;  %v3312_v28 = vpack.c.bf16 %v2863_v7, %v2861_v4 }
 0x16a   :  { %v2541_v2 = vrot.slane %v2533_v22, %v2398_v14  ;;  %v2548_v42 = vrot.slane %v2534_v13, %v2398_v14  ;;  %v2556_v16 = vrot.slane %v2549_v19, %v2398_v14  ;;  %v3316_v36 = vpack.c.bf16 %v2938_v1, %v2936_v25 }
 0x16b   :  { %v2440_v23 = vcombine.high %v2399_v53, %v2423_v8  ;;  %v2439_v11 = vcombine.low %v2399_v53, %v2423_v8  ;;  %v2441_v9 = vcombine.low %v2406_v57, %v2430_v40  ;;  %v2442_v27 = vcombine.high %v2406_v57, %v2430_v40 }
 0x16c   :  { %v2558_v50 = vcombine.high %v2517_v24, %v2541_v2  ;;  %v2557_v26 = vcombine.low %v2517_v24, %v2541_v2  ;;  %v2559_v61 = vcombine.low %v2524_v15, %v2548_v42  ;;  %v2560_v51 = vcombine.high %v2524_v15, %v2548_v42 }
 0x16d   :  { %v2561_v46 = vcombine.low %v2532_v12, %v2556_v16  ;;  %v2562_v34 = vcombine.high %v2532_v12, %v2556_v16  ;;  %v2443_v14 = vcombine.low %v2414_v59, %v2438_v10  ;;  %v2444_v54 = vcombine.high %v2414_v59, %v2438_v10 }
 0x16e   :  { %2635 = vmatprep.mubr.f32.mxu0 %v2558_v50  ;;  %2705 = vmatprep.mubr.f32.mxu1 %v2557_v26 }
 0x16f   :  { %2636 = vmatmul.mubr.f32.vlgmr.msra.gmra.mrb[64].mxu0 %v2440_v23  ;;  %2706 = vmatmul.mubr.f32.vlgmr.msra.gmra.mrb[64].mxu1 %v2439_v11 }
 0x170   :  { %3305 = vmatpush1.bf16.xpose.msra.mxu0 %v3304_v44  ;;  %3309 = vmatpush1.bf16.xpose.msra.mxu1 %v3308_v49 }
 0x171   :  { %2779 = vmatprep.mubr.f32.mxu0 %v2559_v61  ;;  %2854 = vmatprep.mubr.f32.mxu1 %v2560_v51 }
 0x172   :  { %3311 = vmatprep.subr.bf16.mxu0 %v3310_v31  ;;  %3315 = vmatprep.subr.bf16.mxu1 %v3314_v0 }
 0x177   :  { %2780 = vmatmul.mubr.f32.vlgmr.msra.gmra.mrb[66].mxu0 %v2441_v9  ;;  %2855 = vmatmul.mubr.f32.vlgmr.msra.gmra.mrb[66].mxu1 %v2442_v27 }
 0x178   :  { %3313 = vmatpush1.bf16.xpose.msra.mxu0 %v3312_v28  ;;  %2929 = vmatprep.mubr.f32.mxu0 %v2561_v46 }
 0x179   :  { %3317 = vmatpush1.bf16.xpose.msra.mxu1 %v3316_v36  ;;  %3004 = vmatprep.mubr.f32.mxu1 %v2562_v34 }
 0x17f   :  { %2930 = vmatmul.mubr.f32.vlgmr.msra.gmra.mrb[68].mxu0 %v2443_v14 }
 0x180   :  { %3005 = vmatmul.mubr.f32.vlgmr.msra.gmra.mrb[68].mxu1 %v2444_v54 }
 0x242   :  { %v2637_v44 = vpop.f32.mrb[64].mxu0  ;;  %v2707_v49 = vpop.f32.mrb[64].mxu1 }
 0x243   :  { %v2708_v5 = vadd.f32 %v2707_v49, %v2637_v44  ;;  %v2639_v33 = vpop.f32.mrb[65].mxu0  ;;  %v2709_v55 = vpop.f32.mrb[65].mxu1 }
 0x24a   :  { %v2781_v41 = vpop.f32.mrb[66].mxu0  ;;  %v2856_v35 = vpop.f32.mrb[66].mxu1 }
 0x24b   :  { %v2785_v21 = vadd.f32 %v2781_v41, %v2708_v5  ;;  %v2783_v63 = vpop.f32.mrb[67].mxu0  ;;  %v2858_v18 = vpop.f32.mrb[67].mxu1 }
 0x24d   :  { %v2860_v38 = vadd.f32 %v2856_v35, %v2785_v21 }
 0x252   :  { %v2931_v58 = vpop.f32.mrb[68].mxu0 }
 0x253   :  { %v2935_v52 = vadd.f32 %v2931_v58, %v2860_v38  ;;  %v3006_v6 = vpop.f32.mrb[68].mxu1  ;;  %v2933_v45 = vpop.f32.mrb[69].mxu0 }
 0x254   :  { %v3008_v32 = vpop.f32.mrb[69].mxu1 }
 0x255   :  { %v3010_v20 = vadd.f32 %v3006_v6, %v2935_v52 }
 0x257   :  { %v3018_v43 = vadd.f32 %v3293_v37, %v3010_v20 }
 0x259   :  { %v3020_v48 = vsel %vm3019_vm3, %v3018_v43, -inf }
 0x25a   :  { %3021 = vmax.xlane.f32.xlu0 %v3020_v48 }
 0x2e7   :  { %v3022_v3 = vpop.xlane.xlu0 %3021 }
 0x2e8   :  { %v3023_v17 = vsub.f32 %v3018_v43, %v3022_v3 }
 0x2ea   :  { %v3024_v53 = vmul.f32 1.442695, %v3023_v17 }
 0x2ec   :  { %3323 = vpow2.f32 %v3024_v53 }
 0x2f6   :  { %v3324_v57 = vpop.eup %3323 }
 0x2f7   :  { %v3026_v47 = vsel %vm3019_vm3, %v3324_v57, 0.0 }
 0x2f8   :  { %3027 = vadd.xlane.f32.xlu1 %v3026_v47 }
 0x385   :  { %v3028_v30 = vpop.xlane.xlu1 %3027 }
 0x386   :  { %3325 = vlog2.f32 %v3028_v30 }
 0x390   :  { %v3326_v60 = vpop.eup %3325 }
 0x391   :  { %v3030_v24 = vmul.f32 0.6931472, %v3326_v60 }
 0x393   :  { %v3031_v22 = vsub.f32 %v3023_v17, %v3030_v24 }
 0x395   :  { %3032 = vst.msk [vmem:[%s4470_s5] sm:$0xff] %vm3019_vm3, %v3031_v22 }

</bundles_post_ra>
